<compile_context>
chip_gen: v7x
topology: tpu7x:2x2x1
jax: 0.10.0
libtpu: 0.0.40
codegen_flags: <defaults>
</compile_context>

<pallas_src>
import math
import functools
import numpy as np

import jax
import jax.numpy as jnp
from jax.experimental import pallas as pl
from jax.experimental.pallas import tpu as pltpu


def _block_kernel(x_ref, madd_ref,
                  wqkv_ref, bqkv_ref, w1_ref, b1_ref, w2_ref, b2_ref,
                  out_ref, *, seq_len, num_heads):
    l = pl.program_id(1)                       # layer index (inner "arbitrary" carry axis)
    BS, C = x_ref.shape                        # (batch_tile * S, C)
    S = seq_len
    B = BS // S                                # batch rows in this tile
    H = num_heads
    hd = C // H

    # Seed the residual stream once per batch tile; the output block stays resident
    # across the depth axis (same block index for every l).
    @pl.when(l == 0)
    def _init():
        out_ref[...] = x_ref[...]

    x2 = out_ref[...]                          # (B*S, C) f32 running residual stream
    xb = x2.astype(jnp.bfloat16)

    # Fused q|k|v projection: one bf16 MXU matmul with f32 accumulation.
    # (softmax scale pre-folded into the q columns; LoRA pre-folded into w1/w2.)
    qkv = jnp.dot(xb, wqkv_ref[0], preferred_element_type=jnp.float32) + bqkv_ref[0]
    q2 = qkv[:, :C]
    k2 = qkv[:, C:2 * C]
    v2 = qkv[:, 2 * C:]

    def to_heads(t2):                          # (B*S, C) -> (B*H, S, hd)
        return (t2.reshape(B, S, H, hd).transpose(0, 2, 1, 3)
                  .reshape(B * H, S, hd).astype(jnp.bfloat16))
    qh, kh, vh = to_heads(q2), to_heads(k2), to_heads(v2)

    # Head-batched attention; compact (B, 1, S) additive key mask broadcast over heads
    # and query rows inside the kernel (keys are the lane axis -> cheap broadcast).
    madd = madd_ref[...]                       # (B, 1, S), values in {0, -1e30}
    s = jnp.einsum('bqd,bkd->bqk', qh, kh, preferred_element_type=jnp.float32)
    s = (s.reshape(B, H, S, S) + madd[:, None, :, :]).reshape(B * H, S, S)
    m = jnp.max(s, axis=-1, keepdims=True)
    e = jnp.exp(s - m)
    p = e * pl.reciprocal(jnp.sum(e, axis=-1, keepdims=True), approx=True)
    xa = jnp.einsum('bqk,bkd->bqd', p.astype(jnp.bfloat16), vh,
                    preferred_element_type=jnp.float32)            # (B*H, S, hd)

    # Rows whose key mask is entirely False: torch gets NaN -> 0; zero them here.
    # Validity derived in-kernel from the compact mask (no extra input stream).
    valid = (jnp.max(madd, axis=-1, keepdims=True) > -0.5).astype(jnp.float32)  # (B,1,1)
    xa2 = ((xa.reshape(B, H, S, hd) * valid[:, :, :, None])
           .transpose(0, 2, 1, 3).reshape(BS, C))                   # (B*S, C) f32

    # Mlp: fc1 (LoRA folded) -> exact (erf) GELU -> fc2 (LoRA folded)
    xab = xa2.astype(jnp.bfloat16)
    h1 = jnp.dot(xab, w1_ref[0], preferred_element_type=jnp.float32) + b1_ref[0]
    h1 = 0.5 * h1 * (1.0 + jax.lax.erf(h1 * jnp.float32(1.0 / math.sqrt(2.0))))
    y2 = jnp.dot(h1.astype(jnp.bfloat16), w2_ref[0],
                 preferred_element_type=jnp.float32) + b2_ref[0]

    # Attention: x_out = x_attn + mlp(x_attn);  Block: x = x + x_out
    out_ref[...] = x2 + xa2 + y2


def _pick_vmem_limit_bytes():
    """Per-generation scoped-VMEM cap (leave headroom below physical)."""
    kind = jax.devices()[0].device_kind.lower()
    if 'v7' in kind:
        return 48 * 1024 * 1024          # 64 MiB physical on v7x; keep 16 MiB headroom
    if 'v5' in kind or 'v6' in kind:
        return 100 * 1024 * 1024         # 128 MiB physical on v5e / v6e
    return None                          # other chips: keep the compiler default


@functools.partial(jax.jit,
                   static_argnames=('modality', 'num_heads', 'lora_scale', 'batch_tiles'))
def block_forward(x, mask, *, modality, params, num_heads, lora_scale=1.0,
                  batch_tiles=None):
    """Whole depth-layer Block as one pallas_call; grid = (batch_tiles, depth)."""
    B, S, C = x.shape
    depth = params['wq'].shape[0]
    hidden = params['w1'].shape[-1]
    hd = C // num_heads
    scale = hd ** (-0.5)

    # Batch-parallel outer axis: only split across TensorCores when each shard keeps
    # enough rows (>= ~256) that per-tile weight re-streaming stays compute-bound.
    if batch_tiles is not None:
        nb = batch_tiles
    else:
        nb = 2 if (B % 2 == 0 and (B // 2) * S >= 256) else 1
    tb = B // nb

    # ---- compact mask material (B, 1, S), broadcast happens inside the kernel -------
    # torch: mask = {'a': mask[:, :S], 't': mask[:, S:2S], 'v': mask[:, 2S:3S]}[modality]
    seg = {'a': 0, 't': 1, 'v': 2}[modality]
    maskb = mask[:, seg * S:(seg + 1) * S].astype(jnp.bool_)             # (B, S)
    madd = jnp.where(maskb, 0.0, -1e30).astype(jnp.float32)[:, None, :]  # (B, 1, S)

    # ---- fold eval-time constants into the weights, cast matmul weights to bf16 -----
    f32, bf16 = jnp.float32, jnp.bfloat16
    # fused q|k|v weight/bias; softmax scale folded into the q columns.
    wqkv = jnp.concatenate([params['wq'] * scale, params['wk'], params['wv']],
                           axis=-1).astype(bf16)                          # (L, C, 3C)
    bqkv = jnp.concatenate([params['bq'] * scale, params['bk'], params['bv']],
                           axis=-1).astype(f32)                           # (L, 1, 3C)
    w1 = (params['w1'] + lora_scale *
          jnp.einsum('lcr,lrh->lch', params['a1'], params['lb1'])).astype(bf16)
    b1 = params['b1'].astype(f32)
    w2 = (params['w2'] + lora_scale *
          jnp.einsum('lhr,lrc->lhc', params['a2'], params['lb2'])).astype(bf16)
    b2 = params['b2'].astype(f32)

    x2d = x.reshape(B * S, C).astype(f32)

    def per_layer(arr):
        return pl.BlockSpec((1,) + arr.shape[1:], lambda b, l: (l, 0, 0))

    kernel = functools.partial(_block_kernel, seq_len=S, num_heads=num_heads)

    in_specs = [
        pl.BlockSpec((tb * S, C), lambda b, l: (b, 0)),                  # x residual seed
        pl.BlockSpec((tb, 1, S), lambda b, l: (b, 0, 0)),                # compact key mask
        per_layer(wqkv), per_layer(bqkv),
        per_layer(w1), per_layer(b1),
        per_layer(w2), per_layer(b2),
    ]

    # Advisory cost estimate so XLA schedules the wrapper-side folds around the kernel.
    flops = int(depth * 2 * B * S * C * (3 * C + 2 * S + 2 * hidden))
    transc = int(depth * (B * num_heads * S * S + B * S * hidden))
    bytes_acc = int(depth * 2 * (3 * C * C + 2 * C * hidden)             # bf16 weights
                    + depth * 4 * (4 * C + hidden)                       # f32 biases
                    + 2 * B * S * C * 4 + B * S * 4)                     # x in/out + mask
    cost = pl.CostEstimate(flops=flops, transcendentals=transc, bytes_accessed=bytes_acc)

    out2d = pl.pallas_call(
        kernel,
        out_shape=jax.ShapeDtypeStruct((B * S, C), jnp.float32),
        grid_spec=pltpu.PrefetchScalarGridSpec(
            num_scalar_prefetch=0,
            grid=(nb, depth),                    # batch tiles (parallel) x layers (carry)
            in_specs=in_specs,
            out_specs=pl.BlockSpec((tb * S, C), lambda b, l: (b, 0)),
        ),
        compiler_params=pltpu.CompilerParams(
            dimension_semantics=("parallel", "arbitrary"),
            vmem_limit_bytes=_pick_vmem_limit_bytes()),
        cost_estimate=cost,
        # Output aliases the x residual-stream buffer (x is still read at l == 0 to seed
        # the resident output block, since output VMEM is not preloaded from HBM).
        input_output_aliases={0: 0},
    )(x2d, madd, wqkv, bqkv, w1, b1, w2, b2)

    # TODO(synk): per-task `xs` dict of MCULoRALinear not materialized (definition not
    # provided; it does not influence the main `x` path), returned as None.
    return out2d.reshape(B, S, C), None


def init_params(key, depth, C, hidden, r):
    """Deterministic synthetic weights; matrices stored as (in_features, out_features)."""
    shapes = {
        'wq': (depth, C, C), 'bq': (depth, 1, C),
        'wk': (depth, C, C), 'bk': (depth, 1, C),
        'wv': (depth, C, C), 'bv': (depth, 1, C),
        'w1': (depth, C, hidden), 'b1': (depth, 1, hidden),
        'a1': (depth, C, r), 'lb1': (depth, r, hidden),
        'w2': (depth, hidden, C), 'b2': (depth, 1, C),
        'a2': (depth, hidden, r), 'lb2': (depth, r, C),
    }
    params = {}
    keys = jax.random.split(key, len(shapes))
    for k_, (name, shp) in zip(keys, shapes.items()):
        params[name] = jax.random.normal(k_, shp, jnp.float32) * 0.05
    return params


def reference_block(x, mask_seg, params, num_heads, lora_scale=1.0):
    """Pure-JAX f32 reference mirroring the PyTorch forward (eval mode)."""
    B, S, C = x.shape
    depth = params['wq'].shape[0]
    hd = C // num_heads
    scale = hd ** (-0.5)
    maskb = mask_seg > 0.5
    for l in range(depth):
        q = (x @ params['wq'][l] + params['bq'][l]) * scale
        k = x @ params['wk'][l] + params['bk'][l]
        v = x @ params['wv'][l] + params['bv'][l]
        qh = q.reshape(B, S, num_heads, hd).transpose(0, 2, 1, 3)
        kh = k.reshape(B, S, num_heads, hd).transpose(0, 2, 1, 3)
        vh = v.reshape(B, S, num_heads, hd).transpose(0, 2, 1, 3)
        attn = jnp.einsum('bhqd,bhkd->bhqk', qh, kh)
        attn = jnp.where(maskb[:, None, None, :], attn, -jnp.inf)
        m = jnp.max(attn, axis=-1, keepdims=True)
        e = jnp.exp(attn - m)
        attn = e / jnp.sum(e, axis=-1, keepdims=True)
        attn = jnp.where(jnp.isnan(attn), 0.0, attn)
        x_attn = jnp.einsum('bhqk,bhkd->bhqd', attn, vh).transpose(0, 2, 1, 3).reshape(B, S, C)
        h1 = (x_attn @ params['w1'][l] + params['b1'][l]
              + lora_scale * ((x_attn @ params['a1'][l]) @ params['lb1'][l]))
        h1 = 0.5 * h1 * (1.0 + jax.lax.erf(h1 / jnp.sqrt(2.0)))
        y = (h1 @ params['w2'][l] + params['b2'][l]
             + lora_scale * ((h1 @ params['a2'][l]) @ params['lb2'][l]))
        x = x + (x_attn + y)
    return x


if __name__ == "__main__":
    B, S, C = 2, 8, 32
    num_heads, depth = 4, 4
    mlp_ratio = 4.0
    hidden = int(C * mlp_ratio)
    r = 8

    key = jax.random.PRNGKey(0)
    kx, kmask, kp = jax.random.split(key, 3)
    x = jax.random.normal(kx, (B, S, C), jnp.float32)

    # mask has shape (B, 3*S) like the torch module; batch 1's 'a' segment is fully
    # masked to exercise the NaN -> 0 path of the masked softmax.
    mask = jax.random.bernoulli(kmask, 0.7, (B, 3 * S))
    mask = mask.at[0, 0].set(True)
    mask = mask.at[1, :S].set(False)

    params = init_params(kp, depth, C, hidden, r)

    out, xs = block_forward(x, mask, modality='a', params=params, num_heads=num_heads)
    out = jax.block_until_ready(out)

    ref = reference_block(x, mask[:, :S].astype(jnp.float32), params, num_heads)
    # Tolerance widened vs. a pure-f32 version: kernel matmuls use bf16 inputs with
    # f32 accumulation (MXU-native) while the reference stays f32.
    np.testing.assert_allclose(np.asarray(out), np.asarray(ref), rtol=2e-2, atol=2e-2)

    print("KERNEL_OK")
</pallas_src>

<mosaic_0001>
module attributes {stable_mosaic.version = 11 : i64} {
  func.func @_block_kernel(%arg0: i32, %arg1: i32, %arg2: memref<16x32xf32, #tpu.memory_space<vmem>>, %arg3: memref<2x1x8xf32, #tpu.memory_space<vmem>>, %arg4: memref<1x32x96xbf16, #tpu.memory_space<vmem>>, %arg5: memref<1x1x96xf32, #tpu.memory_space<vmem>>, %arg6: memref<1x32x128xbf16, #tpu.memory_space<vmem>>, %arg7: memref<1x1x128xf32, #tpu.memory_space<vmem>>, %arg8: memref<1x128x32xbf16, #tpu.memory_space<vmem>>, %arg9: memref<1x1x32xf32, #tpu.memory_space<vmem>>, %arg10: memref<16x32xf32, #tpu.memory_space<vmem>>) attributes {dimension_semantics = [#tpu.dimension_semantics<parallel>, #tpu.dimension_semantics<arbitrary>], iteration_bounds = array<i64: 1, 4>, scalar_prefetch = 0 : i64, scratch_operands = 0 : i64, tpu.core_type = #tpu.core_type<tc>, window_params = [{transform_indices = @transform_0, window_bounds = array<i64: 16, 32>}, {transform_indices = @transform_1, window_bounds = array<i64: 2, 1, 8>}, {transform_indices = @transform_2, window_bounds = array<i64: 1, 32, 96>}, {transform_indices = @transform_3, window_bounds = array<i64: 1, 1, 96>}, {transform_indices = @transform_4, window_bounds = array<i64: 1, 32, 128>}, {transform_indices = @transform_5, window_bounds = array<i64: 1, 1, 128>}, {transform_indices = @transform_6, window_bounds = array<i64: 1, 128, 32>}, {transform_indices = @transform_7, window_bounds = array<i64: 1, 1, 32>}, {transform_indices = @transform_8, window_bounds = array<i64: 16, 32>}]} {
    %c0_i32 = arith.constant 0 : i32
    %0 = arith.cmpi eq, %arg1, %c0_i32 : i32
    %1 = arith.extui %0 : i1 to i32
    %c0_i32_0 = arith.constant 0 : i32
    %2 = arith.cmpi ne, %1, %c0_i32_0 : i32
    scf.if %2 {
      %c0_36 = arith.constant 0 : index
      %c0_37 = arith.constant 0 : index
      %85 = vector.load %arg2[%c0_36, %c0_37] : memref<16x32xf32, #tpu.memory_space<vmem>>, vector<16x32xf32>
      %c0_38 = arith.constant 0 : index
      %c0_39 = arith.constant 0 : index
      %86 = vector.load %arg10[%c0_38, %c0_39] : memref<16x32xf32, #tpu.memory_space<vmem>>, vector<16x32xf32>
      tpu.vector_store %arg10[%c0_38, %c0_39], %85 {strides = array<i32>} : memref<16x32xf32, #tpu.memory_space<vmem>>, vector<16x32xf32>,
    } else {
    }
    %c0 = arith.constant 0 : index
    %c0_1 = arith.constant 0 : index
    %3 = vector.load %arg10[%c0, %c0_1] : memref<16x32xf32, #tpu.memory_space<vmem>>, vector<16x32xf32>
    %4 = arith.truncf %3 : vector<16x32xf32> to vector<16x32xbf16>
    %c0_2 = arith.constant 0 : index
    %c0_3 = arith.constant 0 : index
    %c0_4 = arith.constant 0 : index
    %5 = vector.load %arg4[%c0_2, %c0_3, %c0_4] : memref<1x32x96xbf16, #tpu.memory_space<vmem>>, vector<1x32x96xbf16>
    %6 = vector.shape_cast %5 : vector<1x32x96xbf16> to vector<32x96xbf16>
    %cst = arith.constant dense<0.000000e+00> : vector<16x96xf32>
    %7 = tpu.matmul %4, %6, %cst {dimension_numbers = #tpu.dot_dimension_numbers<[1], [0], [0], [1], [0, 0, 1, 1], [], []>} : vector<16x32xbf16>, vector<32x96xbf16>, vector<16x96xf32> -> vector<16x96xf32>
    %c0_5 = arith.constant 0 : index
    %c0_6 = arith.constant 0 : index
    %c0_7 = arith.constant 0 : index
    %8 = vector.load %arg5[%c0_5, %c0_6, %c0_7] : memref<1x1x96xf32, #tpu.memory_space<vmem>>, vector<1x1x96xf32>
    %9 = vector.shape_cast %8 : vector<1x1x96xf32> to vector<1x96xf32>
    %10 = vector.broadcast %9 : vector<1x96xf32> to vector<16x96xf32>
    %11 = arith.addf %7, %10 : vector<16x96xf32>
    %12 = vector.extract_strided_slice %11 {offsets = [0, 0], sizes = [16, 32], strides = [1, 1]} : vector<16x96xf32> to vector<16x32xf32>
    %13 = vector.extract_strided_slice %11 {offsets = [0, 32], sizes = [16, 32], strides = [1, 1]} : vector<16x96xf32> to vector<16x32xf32>
    %14 = vector.extract_strided_slice %11 {offsets = [0, 64], sizes = [16, 32], strides = [1, 1]} : vector<16x96xf32> to vector<16x32xf32>
    %15 = vector.shape_cast %12 : vector<16x32xf32> to vector<2x8x4x8xf32>
    %16 = tpu.transpose %15, [0, 2, 1, 3] : vector<2x8x4x8xf32> -> vector<2x4x8x8xf32>
    %17 = vector.shape_cast %16 : vector<2x4x8x8xf32> to vector<8x8x8xf32>
    %18 = arith.truncf %17 : vector<8x8x8xf32> to vector<8x8x8xbf16>
    %19 = vector.shape_cast %13 : vector<16x32xf32> to vector<2x8x4x8xf32>
    %20 = tpu.transpose %19, [0, 2, 1, 3] : vector<2x8x4x8xf32> -> vector<2x4x8x8xf32>
    %21 = vector.shape_cast %20 : vector<2x4x8x8xf32> to vector<8x8x8xf32>
    %22 = arith.truncf %21 : vector<8x8x8xf32> to vector<8x8x8xbf16>
    %23 = vector.shape_cast %14 : vector<16x32xf32> to vector<2x8x4x8xf32>
    %24 = tpu.transpose %23, [0, 2, 1, 3] : vector<2x8x4x8xf32> -> vector<2x4x8x8xf32>
    %25 = vector.shape_cast %24 : vector<2x4x8x8xf32> to vector<8x8x8xf32>
    %26 = arith.truncf %25 : vector<8x8x8xf32> to vector<8x8x8xbf16>
    %c0_8 = arith.constant 0 : index
    %c0_9 = arith.constant 0 : index
    %c0_10 = arith.constant 0 : index
    %27 = vector.load %arg3[%c0_8, %c0_9, %c0_10] : memref<2x1x8xf32, #tpu.memory_space<vmem>>, vector<2x1x8xf32>
    "tpu.trace_start"() <{level = 10 : i32, message = "bqd,bkd->bqk"}> : () -> ()
    %cst_11 = arith.constant dense<0.000000e+00> : vector<8x8x8xf32>
    %28 = tpu.matmul %18, %22, %cst_11 {dimension_numbers = #tpu.dot_dimension_numbers<[2], [2], [1], [1], [0, 0, 0, 1, 1, 1], [0], [0]>} : vector<8x8x8xbf16>, vector<8x8x8xbf16>, vector<8x8x8xf32> -> vector<8x8x8xf32>
    "tpu.trace_stop"() : () -> ()
    %29 = vector.shape_cast %28 : vector<8x8x8xf32> to vector<2x4x8x8xf32>
    %30 = vector.shape_cast %27 : vector<2x1x8xf32> to vector<2x1x1x8xf32>
    %31 = vector.broadcast %30 : vector<2x1x1x8xf32> to vector<2x4x8x8xf32>
    %32 = arith.addf %29, %31 : vector<2x4x8x8xf32>
    %33 = vector.shape_cast %32 : vector<2x4x8x8xf32> to vector<8x8x8xf32>
    %cst_12 = arith.constant dense<0xFF800000> : vector<8x8xf32>
    %34 = vector.multi_reduction <maximumf>, %33, %cst_12 [2] : vector<8x8x8xf32> to vector<8x8xf32>
    %35 = vector.shape_cast %34 : vector<8x8xf32> to vector<8x8x1xf32>
    %36 = vector.broadcast %35 : vector<8x8x1xf32> to vector<8x8x8xf32>
    %37 = arith.subf %33, %36 : vector<8x8x8xf32>
    %38 = math.exp %37 : vector<8x8x8xf32>
    %cst_13 = arith.constant dense<0.000000e+00> : vector<8x8xf32>
    %39 = vector.multi_reduction <add>, %38, %cst_13 [2] : vector<8x8x8xf32> to vector<8x8xf32>
    %40 = vector.shape_cast %39 : vector<8x8xf32> to vector<8x8x1xf32>
    %41 = tpu.reciprocal %40 {approx = true} : vector<8x8x1xf32> -> vector<8x8x1xf32>
    %42 = vector.broadcast %41 : vector<8x8x1xf32> to vector<8x8x8xf32>
    %43 = arith.mulf %38, %42 : vector<8x8x8xf32>
    %44 = arith.truncf %43 : vector<8x8x8xf32> to vector<8x8x8xbf16>
    "tpu.trace_start"() <{level = 10 : i32, message = "bqk,bkd->bqd"}> : () -> ()
    %cst_14 = arith.constant dense<0.000000e+00> : vector<8x8x8xf32>
    %45 = tpu.matmul %44, %26, %cst_14 {dimension_numbers = #tpu.dot_dimension_numbers<[2], [1], [1], [2], [0, 0, 0, 1, 1, 2], [0], [0]>} : vector<8x8x8xbf16>, vector<8x8x8xbf16>, vector<8x8x8xf32> -> vector<8x8x8xf32>
    "tpu.trace_stop"() : () -> ()
    %cst_15 = arith.constant dense<0xFF800000> : vector<2x1xf32>
    %46 = vector.multi_reduction <maximumf>, %27, %cst_15 [2] : vector<2x1x8xf32> to vector<2x1xf32>
    %47 = vector.shape_cast %46 : vector<2x1xf32> to vector<2x1x1xf32>
    %cst_16 = arith.constant -5.000000e-01 : f32
    %48 = vector.broadcast %cst_16 : f32 to vector<2x1x1xf32>
    %49 = arith.cmpf ogt, %47, %48 : vector<2x1x1xf32>
    %50 = arith.extui %49 : vector<2x1x1xi1> to vector<2x1x1xi32>
    %51 = arith.sitofp %50 : vector<2x1x1xi32> to vector<2x1x1xf32>
    %52 = vector.shape_cast %45 : vector<8x8x8xf32> to vector<2x4x8x8xf32>
    %53 = vector.shape_cast %51 : vector<2x1x1xf32> to vector<2x1x1x1xf32>
    %54 = vector.broadcast %53 : vector<2x1x1x1xf32> to vector<2x4x8x8xf32>
    %55 = arith.mulf %52, %54 : vector<2x4x8x8xf32>
    %56 = tpu.transpose %55, [0, 2, 1, 3] : vector<2x4x8x8xf32> -> vector<2x8x4x8xf32>
    %57 = vector.shape_cast %56 : vector<2x8x4x8xf32> to vector<16x32xf32>
    %58 = arith.truncf %57 : vector<16x32xf32> to vector<16x32xbf16>
    %c0_17 = arith.constant 0 : index
    %c0_18 = arith.constant 0 : index
    %c0_19 = arith.constant 0 : index
    %59 = vector.load %arg6[%c0_17, %c0_18, %c0_19] : memref<1x32x128xbf16, #tpu.memory_space<vmem>>, vector<1x32x128xbf16>
    %60 = vector.shape_cast %59 : vector<1x32x128xbf16> to vector<32x128xbf16>
    %cst_20 = arith.constant dense<0.000000e+00> : vector<16x128xf32>
    %61 = tpu.matmul %58, %60, %cst_20 {dimension_numbers = #tpu.dot_dimension_numbers<[1], [0], [0], [1], [0, 0, 1, 1], [], []>} : vector<16x32xbf16>, vector<32x128xbf16>, vector<16x128xf32> -> vector<16x128xf32>
    %c0_21 = arith.constant 0 : index
    %c0_22 = arith.constant 0 : index
    %c0_23 = arith.constant 0 : index
    %62 = vector.load %arg7[%c0_21, %c0_22, %c0_23] : memref<1x1x128xf32, #tpu.memory_space<vmem>>, vector<1x1x128xf32>
    %63 = vector.shape_cast %62 : vector<1x1x128xf32> to vector<1x128xf32>
    %64 = vector.broadcast %63 : vector<1x128xf32> to vector<16x128xf32>
    %65 = arith.addf %61, %64 : vector<16x128xf32>
    %cst_24 = arith.constant 5.000000e-01 : f32
    %66 = vector.broadcast %cst_24 : f32 to vector<16x128xf32>
    %67 = arith.mulf %66, %65 : vector<16x128xf32>
    %cst_25 = arith.constant 0.707106769 : f32
    %68 = vector.broadcast %cst_25 : f32 to vector<16x128xf32>
    %69 = arith.mulf %65, %68 : vector<16x128xf32>
    %70 = math.erf %69 : vector<16x128xf32>
    %cst_26 = arith.constant 1.000000e+00 : f32
    %71 = vector.broadcast %cst_26 : f32 to vector<16x128xf32>
    %72 = arith.addf %71, %70 : vector<16x128xf32>
    %73 = arith.mulf %67, %72 : vector<16x128xf32>
    %74 = arith.truncf %73 : vector<16x128xf32> to vector<16x128xbf16>
    %c0_27 = arith.constant 0 : index
    %c0_28 = arith.constant 0 : index
    %c0_29 = arith.constant 0 : index
    %75 = vector.load %arg8[%c0_27, %c0_28, %c0_29] : memref<1x128x32xbf16, #tpu.memory_space<vmem>>, vector<1x128x32xbf16>
    %76 = vector.shape_cast %75 : vector<1x128x32xbf16> to vector<128x32xbf16>
    %cst_30 = arith.constant dense<0.000000e+00> : vector<16x32xf32>
    %77 = tpu.matmul %74, %76, %cst_30 {dimension_numbers = #tpu.dot_dimension_numbers<[1], [0], [0], [1], [0, 0, 1, 1], [], []>} : vector<16x128xbf16>, vector<128x32xbf16>, vector<16x32xf32> -> vector<16x32xf32>
    %c0_31 = arith.constant 0 : index
    %c0_32 = arith.constant 0 : index
    %c0_33 = arith.constant 0 : index
    %78 = vector.load %arg9[%c0_31, %c0_32, %c0_33] : memref<1x1x32xf32, #tpu.memory_space<vmem>>, vector<1x1x32xf32>
    %79 = vector.shape_cast %78 : vector<1x1x32xf32> to vector<1x32xf32>
    %80 = vector.broadcast %79 : vector<1x32xf32> to vector<16x32xf32>
    %81 = arith.addf %77, %80 : vector<16x32xf32>
    %82 = arith.addf %3, %57 : vector<16x32xf32>
    %83 = arith.addf %82, %81 : vector<16x32xf32>
    %c0_34 = arith.constant 0 : index
    %c0_35 = arith.constant 0 : index
    %84 = vector.load %arg10[%c0_34, %c0_35] : memref<16x32xf32, #tpu.memory_space<vmem>>, vector<16x32xf32>
    tpu.vector_store %arg10[%c0_34, %c0_35], %83 {strides = array<i32>} : memref<16x32xf32, #tpu.memory_space<vmem>>, vector<16x32xf32>,
    return
  }
  func.func @transform_0(%arg0: i32, %arg1: i32) -> (i32, i32) {
    %c0_i32 = arith.constant 0 : i32
    %c0_i32_0 = arith.constant 0 : i32
    return %arg0, %c0_i32 : i32, i32
  }
  func.func @transform_1(%arg0: i32, %arg1: i32) -> (i32, i32, i32) {
    %c0_i32 = arith.constant 0 : i32
    %c0_i32_0 = arith.constant 0 : i32
    %c0_i32_1 = arith.constant 0 : i32
    return %arg0, %c0_i32, %c0_i32_0 : i32, i32, i32
  }
  func.func @transform_2(%arg0: i32, %arg1: i32) -> (i32, i32, i32) {
    %c0_i32 = arith.constant 0 : i32
    %c0_i32_0 = arith.constant 0 : i32
    %c0_i32_1 = arith.constant 0 : i32
    return %arg1, %c0_i32, %c0_i32_0 : i32, i32, i32
  }
  func.func @transform_3(%arg0: i32, %arg1: i32) -> (i32, i32, i32) {
    %c0_i32 = arith.constant 0 : i32
    %c0_i32_0 = arith.constant 0 : i32
    %c0_i32_1 = arith.constant 0 : i32
    return %arg1, %c0_i32, %c0_i32_0 : i32, i32, i32
  }
  func.func @transform_4(%arg0: i32, %arg1: i32) -> (i32, i32, i32) {
    %c0_i32 = arith.constant 0 : i32
    %c0_i32_0 = arith.constant 0 : i32
    %c0_i32_1 = arith.constant 0 : i32
    return %arg1, %c0_i32, %c0_i32_0 : i32, i32, i32
  }
  func.func @transform_5(%arg0: i32, %arg1: i32) -> (i32, i32, i32) {
    %c0_i32 = arith.constant 0 : i32
    %c0_i32_0 = arith.constant 0 : i32
    %c0_i32_1 = arith.constant 0 : i32
    return %arg1, %c0_i32, %c0_i32_0 : i32, i32, i32
  }
  func.func @transform_6(%arg0: i32, %arg1: i32) -> (i32, i32, i32) {
    %c0_i32 = arith.constant 0 : i32
    %c0_i32_0 = arith.constant 0 : i32
    %c0_i32_1 = arith.constant 0 : i32
    return %arg1, %c0_i32, %c0_i32_0 : i32, i32, i32
  }
  func.func @transform_7(%arg0: i32, %arg1: i32) -> (i32, i32, i32) {
    %c0_i32 = arith.constant 0 : i32
    %c0_i32_0 = arith.constant 0 : i32
    %c0_i32_1 = arith.constant 0 : i32
    return %arg1, %c0_i32, %c0_i32_0 : i32, i32, i32
  }
  func.func @transform_8(%arg0: i32, %arg1: i32) -> (i32, i32) {
    %c0_i32 = arith.constant 0 : i32
    %c0_i32_0 = arith.constant 0 : i32
    return %arg0, %c0_i32 : i32, i32
  }
}

</mosaic_0001>

<bundles_post_ra>
// kernel: block_forward.1
= control target key start
LH: loop header
LB: loop body
LE: loop exit
PB: predicated region body
PF: predicated region fallthrough
CT: control target
= control target key end

     0   :  { %s3374_s27 = smov 0   ;;  %s3376_s28 = smov 0   ;;  %s3942_s0 = inlined_call_operand.vmem [shape: f32[16,32], index: 0, kind: input, shape index: {}, may-alias: {0,8}]   ;;  %s3943_s1 = inlined_call_operand.vmem [shape: f32[2,1,8], index: 1, kind: input, shape index: {}]   ;;  %s3944_s2 = inlined_call_operand.vmem [shape: bf16[4,32,96], index: 2, kind: input, shape index: {}]   ;;  %s3945_s3 = inlined_call_operand.vmem [shape: f32[4,1,96], index: 3, kind: input, shape index: {}]   ;;  %s3946_s4 = inlined_call_operand.vmem [shape: bf16[4,32,128], index: 4, kind: input, shape index: {}]   ;;  %s3947_s5 = inlined_call_operand.vmem [shape: f32[4,1,128], index: 5, kind: input, shape index: {}]   ;;  %s3948_s6 = inlined_call_operand.vmem [shape: bf16[4,128,32], index: 6, kind: input, shape index: {}]   ;;  %s3949_s7 = inlined_call_operand.vmem [shape: f32[4,1,32], index: 7, kind: input, shape index: {}]   ;;  %s3950_s8 = inlined_call_operand.vmem [shape: f32[16,32], index: 8, kind: output, shape index: {}, may-alias: {0,8}]  }
   0x1   :  { %s3378_s29 = smov 0  }
   0x2 LB: > { %s27_s30 = sadd.s32 1, %s3311_s28  ;;  %p2962_p0 = scmp.ge.s32.totalorder %s3315_s29, 1  ;;  %s3315_s29 = sphi %s3378_s29, %s18_s29   ;;  %s3311_s28 = sphi %s3376_s28, %s3952_s28   ;;  %s3307_s27 = sphi %s3374_s27, %s3951_s27  }
   0x3   : > { %p28_p1 = scmp.ge.s32.totalorder %s27_s30, 4  ;;  %p339_p2 = scmp.lt.s32.totalorder %s3315_s29, 5 }
   0x5   : > { %s3954_s30 = smov (%p28_p1, %s27_s30), 0  ;;  %p340_p3 = pnand %p2962_p0, %p339_p2 }
   0x6   : > { %p412_p4 = scmp.lt.s32.totalorder (!%p340_p3), %s3307_s27, 3  ;;  %p2969_p5 = scmp.ne.s32.totalorder (!%p340_p3), %s3307_s27, 0 }
   0x7   : > { %343 = sbr.rel (%p340_p3) target bundleno = 1963 (0x7ab), region = 52 }
   0xe   : > { %s3392_s9 = scalar_select %p412_p4, %s3307_s27, 3 }
   0xf   : > { %446 = sbr.rel (%p2969_p5) target bundleno = 22 (0x16), region = 56  ;;  %v447_v0 = vld [vmem:[%s3942_s0] sm:$0xff] (!%p2969_p5)  ;;  %vm449_vm0 = vcmask (!%p2969_p5), 261120   ;;  %v448_v1 = vld [vmem:[%s3942_s0 + $0x8] sm:$0xff] (!%p2969_p5) }
  0x10   : > { %s3025_s10 = sshll.u32 %s3392_s9, 4  ;;  %s419_s13 = scalar_lea.vmem %s3945_s3, %s3392_s9  ;;  %450 = vst.msk [vmem:[%s3950_s8] sm:$0xff] (!%p2969_p5), %vm449_vm0, %v447_v0  ;;  %451 = vst.msk [vmem:[%s3950_s8 + $0x8] sm:$0xff] (!%p2969_p5), %vm449_vm0, %v448_v1 }
  0x11   : > { %s416_s16 = scalar_lea.vmem %s3944_s2, %s3025_s10  ;;  %s3405_s19 = scalar_lea.vmem %s3946_s4, %s3025_s10 }
  0x12   : > { %s427_s22 = scalar_lea.vmem %s3947_s5, %s3392_s9  ;;  %s3027_s23 = sshll.u32 %s3392_s9, 6 }
  0x13   : > { %s3415_s26 = scalar_lea.vmem %s3948_s6, %s3027_s23  ;;  %s435_s14 = scalar_lea.vmem %s3949_s7, %s3392_s9 }
  0x16 PF: > { %v3243_v2 = vld [vmem:[%s416_s16] sm:$0xff]   ;;  %v3317_v3 = vmov 0.0   ;;  %v3244_v4 = vld [vmem:[%s416_s16 + $0x8] sm:$0xff]   ;;  %vm3318_vm1 = vmmov 0   ;;  %vm478_vm2 = vcmask 261120   ;;  %s3319_s17 = smov 104   ;;  %v548_v23 = vlaneseq }
  0x17   : > { %3075 = vmatprep.subr.bf16.mxu1 %v3317_v3  ;;  %3101 = vmatprep.subr.bf16.mxu0 %v3317_v3  ;;  %v452_v5 = vld [vmem:[%s3950_s8] sm:$0xff]  ;;  %v453_v6 = vld [vmem:[%s3950_s8 + $0x8] sm:$0xff]  ;;  %s3320_s10 = smov 120   ;;  %s3321_s18 = smov 112   ;;  %v3324_v21 = vmov 1983009808  }
  0x18   : > { %3076 = vmatpush3.bf16.msra.mxu1 %v3243_v2  ;;  %3079 = vmatprep.mubr.msk.bf16.mxu1 %vm3318_vm1, %v3317_v3  ;;  %v454_v7 = vpack.c.bf16 %v453_v6, %v452_v5  ;;  %v2970_v8 = vld [vmem:[%s419_s13] ss:$0 sm:$0xff]  ;;  %s3322_s13 = smov 96   ;;  %s3323_s20 = smov 64   ;;  %v546_v22 = vunpack.c.l.s4 %v3324_v21  ;;  %v3480_v25 = vshrl.u32 %v548_v23, 7  ;;  %vm1433_vm3 = vcmask 64512  }
  0x19   : > { %3077 = vmatprep.subr.bf16.mxu1 %v3317_v3  ;;  %3103 = vmatprep.mubr.msk.bf16.mxu0 %vm3318_vm1, %v3317_v3  ;;  %v3325_v26 = vmov 1934713408   ;;  %vm1921_vm4 = vcmask 1043456   ;;  %vm2287_vm5 = vcmask 57344   ;;  %s3326_s25 = smov 8   ;;  %s3327_s11 = smov 16  }
  0x1a   : > { %v547_v24 = vunpack.c.0.s8 %v546_v22  ;;  %v578_v27 = vunpack.c.l.s4 %v3325_v26  ;;  %vm2614_vm8 = vcmask 130048   ;;  %vm2617_vm9 = vcmask 195584  }
  0x1c   : > { %3078 = vmatpush3.bf16.msra.mxu1 %v3244_v4  ;;  %v3484_v29 = vsub.s32 %v547_v24, %v3480_v25  ;;  %v579_v33 = vunpack.c.0.s8 %v578_v27 }
  0x1d   : > { %3083 = vmatprep.subr.bf16.mxu1 %v3317_v3 }
  0x1e   : > { %v3496_v38 = vsub.s32 %v579_v33, %v3480_v25 }
  0x1f   : > { %3080 = vmatmul.mubr.msk.bf16.vlgmr.msra.gmra.mrb[0].mxu1 %vm478_vm2, %v454_v7 }
  0x20   : > { %3085 = vmatprep.mubr.msk.bf16.mxu1 %vm3318_vm1, %v3317_v3 }
  0xf2   : > { %v516_v9 = vpop.f32.mrb[0].mxu1 }
  0xf3   : > { %v517_v10 = vadd.f32 %v2970_v8, %v516_v9  ;;  %v3081_v11 = vpop.f32.mrb[1].mxu1 }
  0xf4   : > { %v519_v12 = vpop.f32.mrb[2].mxu1 }
  0xf5   : > { %537 = vrot.lane.b32.xlu1 %v517_v10, %s3319_s17  ;;  %525 = vrot.lane.b32.xlu0 %v517_v10, %s3320_s10  ;;  %v3082_v13 = vpop.f32.mrb[3].mxu1  ;;  %v3455_v14 = vadd.f32 %v2970_v8, %v519_v12 }
  0xf9   : > { %531 = vrot.lane.b32.xlu0 %v517_v10, %s3321_s18  ;;  %527 = vrot.lane.b32.xlu1 %v3455_v14, %s3320_s10 }
  0xfd   : > { %533 = vrot.lane.b32.xlu0 %v3455_v14, %s3321_s18  ;;  %539 = vrot.lane.b32.xlu1 %v3455_v14, %s3319_s17 }
 0x101   : > { %823 = vrot.lane.b32.xlu0 %v517_v10, %s3322_s13 }
 0x167   : > { %v3460_v15 = vpop.permute.xlu0 %525  ;;  %v3462_v16 = vpop.permute.xlu1 %537 }
 0x168   : > { %827 = vrot.lane.b32.xlu1 %v3460_v15, %s3322_s13  ;;  %v559_v30 = vcombine.low %v3460_v15, %v3462_v16  ;;  %v560_v32 = vcombine.high %v3460_v15, %v3462_v16 }
 0x16a   : > { %v567_v35 = vrot.slane %v559_v30, %v3484_v29  ;;  %v574_v37 = vrot.slane %v560_v32, %v3484_v29 }
 0x16b   : > { %v3465_v17 = vpop.permute.xlu0 %531  ;;  %v3469_v18 = vpop.permute.xlu1 %527 }
 0x16c   : > { %831 = vrot.lane.b32.xlu0 %v3465_v17, %s3322_s13  ;;  %835 = vrot.lane.b32.xlu1 %v3462_v16, %s3322_s13  ;;  %v543_v28 = vcombine.low %v517_v10, %v3465_v17  ;;  %v544_v31 = vcombine.high %v517_v10, %v3465_v17 }
 0x16e   : > { %v551_v34 = vrot.slane %v543_v28, %v3484_v29  ;;  %v558_v36 = vrot.slane %v544_v31, %v3484_v29 }
 0x16f   : > { %v3473_v19 = vpop.permute.xlu0 %533  ;;  %v3475_v20 = vpop.permute.xlu1 %539 }
 0x170   : > { %825 = vrot.lane.b32.xlu0 %v3455_v14, %s3322_s13  ;;  %829 = vrot.lane.b32.xlu1 %v3469_v18, %s3322_s13  ;;  %v575_v39 = vcombine.low %v551_v34, %v567_v35  ;;  %v576_v40 = vcombine.high %v551_v34, %v567_v35  ;;  %v591_v41 = vcombine.low %v558_v36, %v574_v37 }
 0x171   : > { %v592_v42 = vcombine.high %v558_v36, %v574_v37  ;;  %v611_v43 = vcombine.low %v3455_v14, %v3473_v19  ;;  %v627_v44 = vcombine.low %v3469_v18, %v3475_v20  ;;  %v612_v47 = vcombine.high %v3455_v14, %v3473_v19 }
 0x172   : > { %v583_v45 = vrot.slane %v575_v39, %v3496_v38  ;;  %v590_v46 = vrot.slane %v576_v40, %v3496_v38  ;;  %v628_v48 = vcombine.high %v3469_v18, %v3475_v20  ;;  %v599_v49 = vrot.slane %v591_v41, %v3496_v38 }
 0x173   : > { %v606_v50 = vrot.slane %v592_v42, %v3496_v38  ;;  %v619_v51 = vrot.slane %v611_v43, %v3484_v29  ;;  %v635_v52 = vrot.slane %v627_v44, %v3484_v29  ;;  %v626_v55 = vrot.slane %v612_v47, %v3484_v29  ;;  %v824_v61 = vpop.permute.xlu0 %823 }
 0x174   : > { %833 = vrot.lane.b32.xlu0 %v3473_v19, %s3322_s13  ;;  %837 = vrot.lane.b32.xlu1 %v3475_v20, %s3322_s13  ;;  %v679_v53 = vcombine.low %v583_v45, %v590_v46  ;;  %v2974_v54 = vcombine.high %v583_v45, %v590_v46  ;;  %v642_v56 = vrot.slane %v628_v48, %v3484_v29 }
 0x175   : > { %v695_v57 = vcombine.low %v599_v49, %v606_v50  ;;  %v2975_v58 = vcombine.high %v599_v49, %v606_v50  ;;  %v643_v59 = vcombine.low %v619_v51, %v635_v52  ;;  %v644_v60 = vcombine.high %v619_v51, %v635_v52 }
 0x176   : > { %v686_v63 = vrot.slane %v679_v53, %v3484_v29  ;;  %v694_v0 = vrot.slane %v2974_v54, %v3484_v29  ;;  %v659_v1 = vcombine.low %v626_v55, %v642_v56  ;;  %v660_v2 = vcombine.high %v626_v55, %v642_v56 }
 0x177   : > { %v3517_v4 = vrot.slane %v695_v57, %v3484_v29  ;;  %v3520_v5 = vrot.slane %v2975_v58, %v3484_v29  ;;  %v3523_v6 = vrot.slane %v643_v59, %v3496_v38  ;;  %v3526_v7 = vrot.slane %v644_v60, %v3496_v38 }
 0x178   : > { %1127 = vrot.lane.b32.xlu1 %v517_v10, %s3323_s20  ;;  %v3529_v21 = vrot.slane %v659_v1, %v3496_v38  ;;  %v3532_v22 = vrot.slane %v660_v2, %v3496_v38  ;;  %v711_v23 = vcombine.low %v686_v63, %v694_v0  ;;  %v712_v33 = vcombine.high %v686_v63, %v694_v0 }
 0x179   : > { %v747_v30 = vcombine.low %v3523_v6, %v3526_v7  ;;  %v727_v32 = vcombine.low %v3517_v4, %v3520_v5  ;;  %v2976_v40 = vcombine.high %v3523_v6, %v3526_v7  ;;  %v728_v52 = vcombine.high %v3517_v4, %v3520_v5 }
 0x17a   : > { %v763_v41 = vcombine.low %v3529_v21, %v3532_v22  ;;  %v2977_v42 = vcombine.high %v3529_v21, %v3532_v22  ;;  %v3549_v43 = vrot.slane %v711_v23, %v3496_v38  ;;  %v3562_v51 = vrot.slane %v712_v33, %v3496_v38 }
 0x17b   : > { %v3556_v48 = vrot.slane %v747_v30, %v3484_v29  ;;  %v3559_v50 = vrot.slane %v727_v32, %v3496_v38  ;;  %v3583_v32 = vrot.slane %v2976_v40, %v3484_v29 }
 0x17c   : > { %v3586_v33 = vrot.slane %v763_v41, %v3484_v29 }
 0x1da   : > { %v828_v62 = vpop.permute.xlu1 %827 }
 0x1de   : > { %v832_v8 = vpop.permute.xlu0 %831  ;;  %v836_v9 = vpop.permute.xlu1 %835 }
 0x1df   : > { %v847_v10 = vcombine.low %v824_v61, %v832_v8  ;;  %v848_v11 = vcombine.high %v824_v61, %v832_v8  ;;  %v863_v12 = vcombine.low %v828_v62, %v836_v9  ;;  %v864_v13 = vcombine.high %v828_v62, %v836_v9 }
 0x1e1   : > { %v855_v24 = vrot.slane %v847_v10, %v3484_v29  ;;  %v862_v26 = vrot.slane %v848_v11, %v3484_v29  ;;  %v871_v27 = vrot.slane %v863_v12, %v3484_v29  ;;  %v878_v28 = vrot.slane %v864_v13, %v3484_v29 }
 0x1e2   : > { %v826_v31 = vpop.permute.xlu0 %825  ;;  %v830_v39 = vpop.permute.xlu1 %829 }
 0x1e3   : > { %v879_v34 = vcombine.low %v855_v24, %v871_v27  ;;  %v880_v35 = vcombine.high %v855_v24, %v871_v27  ;;  %v895_v36 = vcombine.low %v862_v26, %v878_v28  ;;  %v896_v37 = vcombine.high %v862_v26, %v878_v28 }
 0x1e5   : > { %v887_v44 = vrot.slane %v879_v34, %v3496_v38  ;;  %v894_v45 = vrot.slane %v880_v35, %v3496_v38  ;;  %v903_v46 = vrot.slane %v895_v36, %v3496_v38  ;;  %v910_v47 = vrot.slane %v896_v37, %v3496_v38 }
 0x1e6   : > { %v834_v49 = vpop.permute.xlu0 %833  ;;  %v838_v57 = vpop.permute.xlu1 %837 }
 0x1e7   : > { %v983_v53 = vcombine.low %v887_v44, %v894_v45  ;;  %v2978_v54 = vcombine.high %v887_v44, %v894_v45  ;;  %v999_v55 = vcombine.low %v903_v46, %v910_v47  ;;  %v2979_v56 = vcombine.high %v903_v46, %v910_v47 }
 0x1e8   : > { %v915_v58 = vcombine.low %v826_v31, %v834_v49  ;;  %v916_v59 = vcombine.high %v826_v31, %v834_v49  ;;  %v931_v60 = vcombine.low %v830_v39, %v838_v57  ;;  %v932_v61 = vcombine.high %v830_v39, %v838_v57 }
 0x1e9   : > { %v990_v62 = vrot.slane %v983_v53, %v3484_v29  ;;  %v998_v63 = vrot.slane %v2978_v54, %v3484_v29  ;;  %v1006_v0 = vrot.slane %v999_v55, %v3484_v29  ;;  %v1014_v1 = vrot.slane %v2979_v56, %v3484_v29 }
 0x1ea   : > { %v923_v2 = vrot.slane %v915_v58, %v3484_v29  ;;  %v930_v4 = vrot.slane %v916_v59, %v3484_v29  ;;  %v939_v5 = vrot.slane %v931_v60, %v3484_v29  ;;  %v946_v6 = vrot.slane %v932_v61, %v3484_v29 }
 0x1eb   : > { %v1015_v7 = vcombine.low %v990_v62, %v998_v63  ;;  %v1031_v8 = vcombine.low %v1006_v0, %v1014_v1  ;;  %v1016_v9 = vcombine.high %v990_v62, %v998_v63  ;;  %v1032_v10 = vcombine.high %v1006_v0, %v1014_v1 }
 0x1ec   : > { %v947_v11 = vcombine.low %v923_v2, %v939_v5  ;;  %v948_v12 = vcombine.high %v923_v2, %v939_v5  ;;  %v963_v13 = vcombine.low %v930_v4, %v946_v6  ;;  %v964_v21 = vcombine.high %v930_v4, %v946_v6 }
 0x1ed   : > { %v1023_v22 = vrot.slane %v1015_v7, %v3496_v38  ;;  %v1039_v23 = vrot.slane %v1031_v8, %v3496_v38  ;;  %v1030_v24 = vrot.slane %v1016_v9, %v3496_v38  ;;  %v1046_v26 = vrot.slane %v1032_v10, %v3496_v38 }
 0x1ee   : > { %v955_v27 = vrot.slane %v947_v11, %v3496_v38  ;;  %v962_v28 = vrot.slane %v948_v12, %v3496_v38  ;;  %v971_v30 = vrot.slane %v963_v13, %v3496_v38  ;;  %v978_v31 = vrot.slane %v964_v21, %v3496_v38 }
 0x1ef   : > { %v1047_v34 = vcombine.low %v1023_v22, %v1039_v23  ;;  %v1050_v35 = vcombine.high %v1030_v24, %v1046_v26  ;;  %v778_v45 = vrot.slane %v2977_v42, %v3484_v29  ;;  %v742_v49 = vrot.slane %v728_v52, %v3496_v38 }
 0x1f0   : > { %v1051_v36 = vcombine.low %v955_v27, %v962_v28  ;;  %v2980_v37 = vcombine.high %v955_v27, %v962_v28  ;;  %v1067_v39 = vcombine.low %v971_v30, %v978_v31  ;;  %v2981_v44 = vcombine.high %v971_v30, %v978_v31 }
 0x1f1   : > { %v1119_v46 = vpack.c.bf16 %v1047_v34, %v1047_v34  ;;  %v1122_v47 = vpack.c.bf16 %v1050_v35, %v1050_v35  ;;  %v1048_v57 = vcombine.high %v1023_v22, %v1039_v23  ;;  %v743_v52 = vcombine.low %v3549_v43, %v3559_v50 }
 0x1f2   : > { %v1058_v53 = vrot.slane %v1051_v36, %v3484_v29  ;;  %v1066_v40 = vrot.slane %v2980_v37, %v3484_v29  ;;  %v1074_v54 = vrot.slane %v1067_v39, %v3484_v29  ;;  %v1082_v41 = vrot.slane %v2981_v44, %v3484_v29 }
 0x1f3   : > { %v1438_v55 = vsel %vm1433_vm3, %v1119_v46, 0  ;;  %v1576_v56 = vsel %vm1433_vm3, %v1122_v47, 0  ;;  %v746_v60 = vcombine.high %v3562_v51, %v742_v49  ;;  %v779_v0 = vcombine.low %v3556_v48, %v3583_v32 }
 0x1f4   : > { %3084 = vmatpush3.bf16.xpose.msra.mxu1 %v1438_v55  ;;  %3102 = vmatpush3.bf16.xpose.msra.mxu0 %v1576_v56  ;;  %v1083_v42 = vcombine.low %v1058_v53, %v1066_v40  ;;  %v1099_v58 = vcombine.low %v1074_v54, %v1082_v41  ;;  %v1084_v59 = vcombine.high %v1058_v53, %v1066_v40  ;;  %v3660_v55 = vld [vmem:[%s3943_s1] sm:$0x1] }
 0x1f5   : > { %3089 = vmatprep.subr.bf16.mxu1 %v3317_v3  ;;  %3113 = vmatprep.subr.bf16.mxu0 %v3317_v3  ;;  %v1100_v61 = vcombine.high %v1074_v54, %v1082_v41  ;;  %v795_v1 = vcombine.low %v3586_v33, %v778_v45  ;;  %v1120_v2 = vpack.c.bf16 %v1048_v57, %v1048_v57  ;;  %v3655_v41 = vsub.s32 0, %v3480_v25 }
 0x1f6   : > { %v1091_v62 = vrot.slane %v1083_v42, %v3496_v38  ;;  %v1107_v63 = vrot.slane %v1099_v58, %v3496_v38  ;;  %v1098_v5 = vrot.slane %v1084_v59, %v3496_v38  ;;  %v815_v7 = vpack.c.bf16 %v743_v52, %v743_v52 }
 0x1f7   : > { %v1114_v6 = vrot.slane %v1100_v61, %v3496_v38  ;;  %v818_v8 = vpack.c.bf16 %v746_v60, %v746_v60  ;;  %v787_v10 = vrot.slane %v779_v0, %v3496_v38  ;;  %v803_v11 = vrot.slane %v795_v1, %v3496_v38  ;;  %v3668_v1 = vld [vmem:[%s3943_s1 + $0x1] sm:$0x1] }
 0x1f8   : > { %v1116_v4 = vcombine.high %v1091_v62, %v1107_v63  ;;  %v1484_v12 = vsel %vm1433_vm3, %v1120_v2, 0  ;;  %v1049_v13 = vcombine.low %v1030_v24, %v1046_v26  ;;  %v744_v23 = vcombine.high %v3549_v43, %v3559_v50 }
 0x1f9   : > { %v1118_v22 = vcombine.high %v1098_v5, %v1114_v6  ;;  %v812_v27 = vcombine.high %v787_v10, %v803_v11  ;;  %v780_v24 = vcombine.high %v3556_v48, %v3583_v32  ;;  %v796_v26 = vcombine.high %v3586_v33, %v778_v45 }
 0x1fa   : > { %v1124_v9 = vpack.c.bf16 %v1116_v4, %v1116_v4  ;;  %v1121_v28 = vpack.c.bf16 %v1049_v13, %v1049_v13  ;;  %v816_v31 = vpack.c.bf16 %v744_v23, %v744_v23  ;;  %v1115_v50 = vcombine.low %v1091_v62, %v1107_v63 }
 0x1fb   : > { %3086 = vmatmul.mubr.msk.bf16.vlgmr.msra.gmra.mrb[4].mxu1 %vm1433_vm3, %v815_v7  ;;  %3104 = vmatmul.mubr.msk.bf16.vlgmr.msra.gmra.mrb[0].mxu0 %vm1433_vm3, %v818_v8  ;;  %v1126_v30 = vpack.c.bf16 %v1118_v22, %v1118_v22  ;;  %v820_v34 = vpack.c.bf16 %v812_v27, %v812_v27  ;;  %v794_v35 = vrot.slane %v780_v24, %v3496_v38 }
 0x1fc   : > { %3090 = vmatpush3.bf16.xpose.msra.mxu1 %v1484_v12  ;;  %v1668_v21 = vsel %vm1433_vm3, %v1124_v9, 0  ;;  %3091 = vmatprep.mubr.msk.bf16.mxu1 %vm3318_vm1, %v3317_v3  ;;  %v810_v36 = vrot.slane %v796_v26, %v3496_v38  ;;  %v1530_v43 = vsel %vm1433_vm3, %v1121_v28, 0  ;;  %v745_v32 = vcombine.low %v3562_v51, %v742_v49 }
 0x1fd   : > { %3114 = vmatpush3.bf16.xpose.msra.mxu0 %v1668_v21  ;;  %3115 = vmatprep.mubr.msk.bf16.mxu0 %vm3318_vm1, %v3317_v3  ;;  %v1760_v48 = vsel %vm1433_vm3, %v1126_v30, 0  ;;  %v1123_v37 = vpack.c.bf16 %v1115_v50, %v1115_v50  ;;  %v1117_v51 = vcombine.low %v1098_v5, %v1114_v6  ;;  %v811_v46 = vcombine.low %v787_v10, %v803_v11 }
 0x1fe   : > { %3095 = vmatprep.subr.bf16.mxu1 %v3317_v3  ;;  %3125 = vmatprep.subr.bf16.mxu0 %v3317_v3  ;;  %v814_v33 = vcombine.high %v794_v35, %v810_v36  ;;  %v817_v39 = vpack.c.bf16 %v745_v32, %v745_v32  ;;  %v813_v40 = vcombine.low %v794_v35, %v810_v36 }
 0x1ff   : > { %v1622_v45 = vsel %vm1433_vm3, %v1123_v37, 0  ;;  %v1125_v47 = vpack.c.bf16 %v1117_v51, %v1117_v51  ;;  %v819_v49 = vpack.c.bf16 %v811_v46, %v811_v46  ;;  %v1807_v56 = vrot.slane %v3660_v55, %v3655_v41 }
 0x200   : > { %v822_v44 = vpack.c.bf16 %v814_v33, %v814_v33  ;;  %v821_v54 = vpack.c.bf16 %v813_v40, %v813_v40  ;;  %v1811_v2 = vrot.slane %v3668_v1, %v3655_v41 }
 0x201   : > { %v1714_v53 = vsel %vm1433_vm3, %v1125_v47, 0 }
 0x203   : > { %3092 = vmatmul.mubr.msk.bf16.vlgmr.msra.gmra.mrb[8].mxu1 %vm1433_vm3, %v816_v31 }
 0x204   : > { %3116 = vmatmul.mubr.msk.bf16.vlgmr.msra.gmra.mrb[4].mxu0 %vm1433_vm3, %v820_v34  ;;  %3096 = vmatpush3.bf16.xpose.msra.mxu1 %v1530_v43 }
 0x205   : > { %3126 = vmatpush3.bf16.xpose.msra.mxu0 %v1760_v48  ;;  %3097 = vmatprep.mubr.msk.bf16.mxu1 %vm3318_vm1, %v3317_v3 }
 0x206   : > { %3127 = vmatprep.mubr.msk.bf16.mxu0 %vm3318_vm1, %v3317_v3  ;;  %3107 = vmatprep.subr.bf16.mxu1 %v3317_v3 }
 0x207   : > { %3137 = vmatprep.subr.bf16.mxu0 %v3317_v3 }
 0x20b   : > { %3098 = vmatmul.mubr.msk.bf16.vlgmr.msra.gmra.mrb[12].mxu1 %vm1433_vm3, %v817_v39 }
 0x20c   : > { %3128 = vmatmul.mubr.msk.bf16.vlgmr.msra.gmra.mrb[8].mxu0 %vm1433_vm3, %v822_v44  ;;  %3108 = vmatpush3.bf16.xpose.msra.mxu1 %v1622_v45 }
 0x20d   : > { %3109 = vmatprep.mubr.msk.bf16.mxu1 %vm3318_vm1, %v3317_v3  ;;  %3119 = vmatprep.subr.bf16.mxu1 %v3317_v3 }
 0x20e   : > { %3139 = vmatprep.mubr.msk.bf16.mxu0 %vm3318_vm1, %v3317_v3 }
 0x213   : > { %3110 = vmatmul.mubr.msk.bf16.vlgmr.msra.gmra.mrb[16].mxu1 %vm1433_vm3, %v819_v49 }
 0x214   : > { %3120 = vmatpush3.bf16.xpose.msra.mxu1 %v1714_v53  ;;  %3121 = vmatprep.mubr.msk.bf16.mxu1 %vm3318_vm1, %v3317_v3 }
 0x215   : > { %3131 = vmatprep.subr.bf16.mxu1 %v3317_v3 }
 0x21b   : > { %3122 = vmatmul.mubr.msk.bf16.vlgmr.msra.gmra.mrb[20].mxu1 %vm1433_vm3, %v821_v54 }
 0x21c   : > { %3133 = vmatprep.mubr.msk.bf16.mxu1 %vm3318_vm1, %v3317_v3 }
 0x2ce   : > { %v1474_v57 = vpop.f32.mrb[4].mxu1  ;;  %v1612_v42 = vpop.f32.mrb[0].mxu0 }
 0x2cf   : > { %v1814_v58 = vadd.f32 %v1807_v56, %v1474_v57  ;;  %v3087_v59 = vpop.f32.mrb[5].mxu1  ;;  %v3105_v52 = vpop.f32.mrb[1].mxu0  ;;  %v1817_v62 = vadd.f32 %v1807_v56, %v1612_v42 }
 0x2d0   : > { %v1477_v60 = vpop.f32.mrb[6].mxu1  ;;  %v1615_v61 = vpop.f32.mrb[2].mxu0 }
 0x2d1   : > { %v3088_v63 = vpop.f32.mrb[7].mxu1  ;;  %v3106_v0 = vpop.f32.mrb[3].mxu0  ;;  %v1822_v25 = vsel %vm1433_vm3, %v1814_v58, -inf  ;;  %v1831_v4 = vsel %vm1433_vm3, %v1817_v62, -inf }
 0x2d2   : > { %1823 = vmax.xlane.f32.xlu0 %v1822_v25 }
 0x2d6   : > { %1832 = vmax.xlane.f32.xlu0 %v1831_v4  ;;  %v1520_v5 = vpop.f32.mrb[8].mxu1 }
 0x2d7   : > { %v1704_v6 = vpop.f32.mrb[4].mxu0  ;;  %v1815_v7 = vadd.f32 %v1807_v56, %v1520_v5  ;;  %v3093_v8 = vpop.f32.mrb[9].mxu1 }
 0x2d8   : > { %v1819_v9 = vadd.f32 %v1811_v2, %v1704_v6  ;;  %v3117_v10 = vpop.f32.mrb[5].mxu0  ;;  %v1523_v11 = vpop.f32.mrb[10].mxu1 }
 0x2d9   : > { %v1707_v12 = vpop.f32.mrb[6].mxu0  ;;  %v3094_v13 = vpop.f32.mrb[11].mxu1  ;;  %v1825_v21 = vsel %vm1433_vm3, %v1815_v7, -inf }
 0x2da   : > { %v3118_v22 = vpop.f32.mrb[7].mxu0  ;;  %v1837_v23 = vsel %vm1433_vm3, %v1819_v9, -inf  ;;  %1826 = vmax.xlane.f32.xlu1 %v1825_v21 }
 0x2db   : > { %1838 = vmax.xlane.f32.xlu0 %v1837_v23 }
 0x2de   : > { %v1566_v27 = vpop.f32.mrb[12].mxu1 }
 0x2df   : > { %v1816_v24 = vadd.f32 %v1807_v56, %v1566_v27  ;;  %v1796_v26 = vpop.f32.mrb[8].mxu0  ;;  %v3099_v28 = vpop.f32.mrb[13].mxu1 }
 0x2e0   : > { %v3129_v30 = vpop.f32.mrb[9].mxu0  ;;  %v1569_v31 = vpop.f32.mrb[14].mxu1  ;;  %v3675_v34 = vadd.f32 %v1811_v2, %v1796_v26 }
 0x2e1   : > { %v1799_v35 = vpop.f32.mrb[10].mxu0  ;;  %v3100_v36 = vpop.f32.mrb[15].mxu1  ;;  %v1828_v43 = vsel %vm1433_vm3, %v1816_v24, -inf }
 0x2e2   : > { %v3130_v50 = vpop.f32.mrb[11].mxu0  ;;  %1829 = vmax.xlane.f32.xlu0 %v1828_v43  ;;  %v1843_v48 = vsel %vm1433_vm3, %v3675_v34, -inf  ;;  %v1128_v56 = vpop.permute.xlu1 %1127 }
 0x2e6   : > { %1844 = vmax.xlane.f32.xlu0 %v1843_v48  ;;  %v1658_v32 = vpop.f32.mrb[16].mxu1 }
 0x2e7   : > { %v3111_v33 = vpop.f32.mrb[17].mxu1  ;;  %v3686_v47 = vadd.f32 %v1811_v2, %v1658_v32 }
 0x2e8   : > { %v1661_v37 = vpop.f32.mrb[18].mxu1 }
 0x2e9   : > { %v3112_v39 = vpop.f32.mrb[19].mxu1  ;;  %v1834_v53 = vsel %vm1433_vm3, %v3686_v47, -inf }
 0x2eb   : > { %1135 = vrot.lane.b32.xlu1 %v3465_v17, %s3323_s20 }
 0x2ee   : > { %v1750_v44 = vpop.f32.mrb[20].mxu1 }
 0x2ef   : > { %1139 = vrot.lane.b32.xlu1 %v3462_v16, %s3323_s20  ;;  %v3123_v45 = vpop.f32.mrb[21].mxu1  ;;  %v3688_v49 = vadd.f32 %v1811_v2, %v1750_v44 }
 0x2f0   : > { %v1753_v51 = vpop.f32.mrb[22].mxu1 }
 0x2f1   : > { %v3124_v46 = vpop.f32.mrb[23].mxu1  ;;  %v1840_v17 = vsel %vm1433_vm3, %v3688_v49, -inf }
 0x2fc   : > { %1131 = vrot.lane.b32.xlu0 %v3460_v15, %s3323_s20 }
 0x313   : > { %1835 = vmax.xlane.f32.xlu1 %v1834_v53 }
 0x317   : > { %1841 = vmax.xlane.f32.xlu1 %v1840_v17 }
 0x328   : > { %1129 = vrot.lane.b32.xlu1 %v3455_v14, %s3323_s20 }
 0x35f   : > { %v1824_v16 = vpop.xlane.xlu0 %1823 }
 0x360   : > { %v1846_v40 = vsub.f32 %v1814_v58, %v1824_v16 }
 0x362   : > { %v1854_v54 = vmul.f32 1.442695, %v1846_v40 }
 0x363   : > { %v1833_v15 = vpop.xlane.xlu0 %1832 }
 0x364   : > { %3255 = vpow2.f32 %v1854_v54  ;;  %v1849_v57 = vsub.f32 %v1817_v62, %v1833_v15 }
 0x366   : > { %v1860_v42 = vmul.f32 1.442695, %v1849_v57 }
 0x367   : > { %v1827_v59 = vpop.xlane.xlu1 %1826 }
 0x368   : > { %3257 = vpow2.f32 %v1860_v42  ;;  %v1839_v52 = vpop.xlane.xlu0 %1838  ;;  %v1847_v60 = vsub.f32 %v1815_v7, %v1827_v59 }
 0x369   : > { %v1851_v61 = vsub.f32 %v1819_v9, %v1839_v52 }
 0x36a   : > { %v1856_v63 = vmul.f32 1.442695, %v1847_v60 }
 0x36b   : > { %v1864_v0 = vmul.f32 1.442695, %v1851_v61  ;;  %v1136_v4 = vpop.permute.xlu1 %1135 }
 0x36c   : > { %3259 = vpow2.f32 %v1856_v63  ;;  %v1151_v9 = vcombine.low %v1128_v56, %v1136_v4  ;;  %v1152_v10 = vcombine.high %v1128_v56, %v1136_v4 }
 0x36d   : > { %3261 = vpow2.f32 %v1864_v0 }
 0x36e   : > { %v3696_v25 = vpop.eup %3255  ;;  %v1159_v27 = vrot.slane %v1151_v9, %v3484_v29 }
 0x36f   : > { %v1830_v14 = vpop.xlane.xlu0 %1829  ;;  %v1870_v58 = vsel %vm1433_vm3, %v3696_v25, 0.0  ;;  %v1140_v11 = vpop.permute.xlu1 %1139 }
 0x370   : > { %v1848_v2 = vsub.f32 %v1816_v24, %v1830_v14  ;;  %1871 = vadd.xlane.f32.xlu1 %v1870_v58  ;;  %v1166_v24 = vrot.slane %v1152_v10, %v3484_v29 }
 0x372   : > { %v3700_v62 = vpop.eup %3257  ;;  %v1858_v5 = vmul.f32 1.442695, %v1848_v2 }
 0x373   : > { %v3702_v6 = vpop.xlane.xlu0 %1844  ;;  %v1879_v7 = vsel %vm1433_vm3, %v3700_v62, 0.0 }
 0x374   : > { %3263 = vpow2.f32 %v1858_v5  ;;  %1880 = vadd.xlane.f32.xlu1 %v1879_v7  ;;  %v1853_v5 = vsub.f32 %v3675_v34, %v3702_v6 }
 0x376   : > { %v3706_v8 = vpop.eup %3259  ;;  %v1868_v7 = vmul.f32 1.442695, %v1853_v5 }
 0x377   : > { %v1132_v12 = vpop.permute.xlu0 %1131  ;;  %v1873_v13 = vsel %vm1433_vm3, %v3706_v8, 0.0  ;;  %v3710_v21 = vpop.eup %3261 }
 0x378   : > { %v1167_v22 = vcombine.low %v1132_v12, %v1140_v11  ;;  %v1168_v23 = vcombine.high %v1132_v12, %v1140_v11  ;;  %1874 = vadd.xlane.f32.xlu0 %v1873_v13  ;;  %v1885_v30 = vsel %vm1433_vm3, %v3710_v21, 0.0  ;;  %3265 = vpow2.f32 %v1868_v7 }
 0x37a   : > { %v1175_v26 = vrot.slane %v1167_v22, %v3484_v29  ;;  %v1182_v28 = vrot.slane %v1168_v23, %v3484_v29 }
 0x37c   : > { %v1183_v31 = vcombine.low %v1159_v27, %v1175_v26  ;;  %v1184_v35 = vcombine.high %v1159_v27, %v1175_v26  ;;  %v1199_v36 = vcombine.low %v1166_v24, %v1182_v28  ;;  %v1200_v43 = vcombine.high %v1166_v24, %v1182_v28  ;;  %1886 = vadd.xlane.f32.xlu0 %v1885_v30 }
 0x37d   : > { %v2288_v24 = vsel %vm2287_vm5, %v3660_v55, -inf }
 0x37e   : > { %v3718_v50 = vpop.eup %3263  ;;  %v1191_v48 = vrot.slane %v1183_v31, %v3496_v38  ;;  %v1198_v32 = vrot.slane %v1184_v35, %v3496_v38  ;;  %v1207_v33 = vrot.slane %v1199_v36, %v3496_v38  ;;  %v1214_v37 = vrot.slane %v1200_v43, %v3496_v38 }
 0x37f   : > { %v1876_v39 = vsel %vm1433_vm3, %v3718_v50, 0.0 }
 0x380   : > { %v1287_v44 = vcombine.low %v1191_v48, %v1198_v32  ;;  %v2982_v45 = vcombine.high %v1191_v48, %v1198_v32  ;;  %v1303_v51 = vcombine.low %v1207_v33, %v1214_v37  ;;  %v2983_v46 = vcombine.high %v1207_v33, %v1214_v37  ;;  %1877 = vadd.xlane.f32.xlu0 %v1876_v39 }
 0x382   : > { %v1294_v53 = vrot.slane %v1287_v44, %v3484_v29  ;;  %v1302_v17 = vrot.slane %v2982_v45, %v3484_v29  ;;  %v1310_v16 = vrot.slane %v1303_v51, %v3484_v29  ;;  %v1318_v40 = vrot.slane %v2983_v46, %v3484_v29  ;;  %v3747_v11 = vpop.eup %3265 }
 0x383   : > { %v1891_v12 = vsel %vm1433_vm3, %v3747_v11, 0.0 }
 0x384   : > { %v1319_v54 = vcombine.low %v1294_v53, %v1302_v17  ;;  %v1335_v56 = vcombine.low %v1310_v16, %v1318_v40  ;;  %v1320_v15 = vcombine.high %v1294_v53, %v1302_v17  ;;  %v1336_v57 = vcombine.high %v1310_v16, %v1318_v40 }
 0x385   : > { %1137 = vrot.lane.b32.xlu1 %v3473_v19, %s3323_s20 }
 0x386   : > { %v1327_v42 = vrot.slane %v1319_v54, %v3496_v38  ;;  %v1343_v59 = vrot.slane %v1335_v56, %v3496_v38  ;;  %v1334_v52 = vrot.slane %v1320_v15, %v3496_v38  ;;  %v1350_v60 = vrot.slane %v1336_v57, %v3496_v38 }
 0x388   : > { %v1351_v61 = vcombine.low %v1327_v42, %v1343_v59  ;;  %v1352_v63 = vcombine.high %v1327_v42, %v1343_v59  ;;  %v1353_v0 = vcombine.low %v1334_v52, %v1350_v60  ;;  %v3736_v14 = vcombine.high %v1334_v52, %v1350_v60 }
 0x389   : > { %1141 = vrot.lane.b32.xlu1 %v3475_v20, %s3323_s20 }
 0x38a   : > { %v1423_v58 = vpack.c.bf16 %v1351_v61, %v1351_v61  ;;  %v1424_v2 = vpack.c.bf16 %v1352_v63, %v1352_v63  ;;  %v1425_v43 = vpack.c.bf16 %v1353_v0, %v1353_v0 }
 0x38c   : > { %v1923_v19 = vsel %vm1921_vm4, %v1423_v58, 0  ;;  %v1969_v4 = vsel %vm1921_vm4, %v1424_v2, 0  ;;  %v2015_v55 = vsel %vm1921_vm4, %v1425_v43, 0 }
 0x38d   : > { %3132 = vmatpush3.bf16.msra.mxu1 %v1923_v19  ;;  %3138 = vmatpush3.bf16.msra.mxu0 %v1969_v4 }
 0x38e   : > { %3143 = vmatprep.subr.bf16.mxu1 %v3317_v3  ;;  %3149 = vmatprep.subr.bf16.mxu0 %v3317_v3 }
 0x3a0   : > { %v1836_v9 = vpop.xlane.xlu1 %1835 }
 0x3a1   : > { %v1850_v20 = vsub.f32 %v3686_v47, %v1836_v9 }
 0x3a3   : > { %v1862_v10 = vmul.f32 1.442695, %v1850_v20 }
 0x3a4   : > { %v1842_v34 = vpop.xlane.xlu1 %1841 }
 0x3a5   : > { %3267 = vpow2.f32 %v1862_v10  ;;  %v1852_v47 = vsub.f32 %v3688_v49, %v1842_v34 }
 0x3a7   : > { %v1866_v6 = vmul.f32 1.442695, %v1852_v47 }
 0x3a8   : > { %v1130_v26 = vpop.permute.xlu1 %1129 }
 0x3a9   : > { %3269 = vpow2.f32 %v1866_v6 }
 0x3ad   : > { %1892 = vadd.xlane.f32.xlu1 %v1891_v12 }
 0x3af   : > { %v3751_v13 = vpop.eup %3267 }
 0x3b0   : > { %v1882_v22 = vsel %vm1433_vm3, %v3751_v13, 0.0 }
 0x3b1   : > { %1883 = vadd.xlane.f32.xlu0 %v1882_v22 }
 0x3b3   : > { %v3758_v23 = vpop.eup %3269 }
 0x3b4   : > { %v1888_v27 = vsel %vm1433_vm3, %v3758_v23, 0.0 }
 0x3c7   : > { %1133 = vrot.lane.b32.xlu0 %v3469_v18, %s3323_s20  ;;  %v2291_v18 = vsel %vm2287_vm5, %v3668_v1, -inf }
 0x3e6   : > { %1889 = vadd.xlane.f32.xlu0 %v1888_v27 }
 0x3ea   : > { %2289 = vmax.xlane.f32.xlu0 %v2288_v24 }
 0x3ee   : > { %2292 = vmax.xlane.f32.xlu0 %v2291_v18 }
 0x3fd   : > { %v1872_v28 = vpop.xlane.xlu1 %1871 }
 0x3fe   : > { %3271 = vrcp.f32 %v1872_v28 }
 0x401   : > { %v1881_v49 = vpop.xlane.xlu1 %1880 }
 0x405   : > { %v1875_v30 = vpop.xlane.xlu0 %1874  ;;  %v1138_v17 = vpop.permute.xlu1 %1137 }
 0x406   : > { %3273 = vrcp.f32 %v1875_v30  ;;  %v1220_v40 = vcombine.high %v1130_v26, %v1138_v17 }
 0x407   : > { %3275 = vrcp.f32 %v1881_v49 }
 0x408   : > { %v3272_v31 = vpop.eup %3271  ;;  %v1234_v42 = vrot.slane %v1220_v40, %v3484_v29 }
 0x409   : > { %v1902_v35 = vmul.f32 %v3272_v31, %v3696_v25  ;;  %v1887_v36 = vpop.xlane.xlu0 %1886  ;;  %v1426_v25 = vpack.c.bf16 %v3736_v14, %v3736_v14  ;;  %v1142_v54 = vpop.permute.xlu1 %1141 }
 0x40b   : > { %v1910_v48 = vpack.c.bf16 %v1902_v35, %v1902_v35  ;;  %v2061_v44 = vsel %vm1921_vm4, %v1426_v25, 0 }
 0x40d   : > { %v1878_v32 = vpop.xlane.xlu0 %1877  ;;  %3134 = vmatmul.mubr.msk.bf16.vlgmr.msra.gmra.mrb[24].mxu1 %vm1433_vm3, %v1910_v48 }
 0x40e   : > { %3277 = vrcp.f32 %v1878_v32  ;;  %3144 = vmatpush3.bf16.msra.mxu1 %v2015_v55  ;;  %3145 = vmatprep.mubr.msk.bf16.mxu1 %vm3318_vm1, %v3317_v3 }
 0x40f   : > { %3155 = vmatprep.subr.bf16.mxu1 %v3317_v3  ;;  %3279 = vrcp.f32 %v1887_v36 }
 0x410   : > { %v3274_v1 = vpop.eup %3273 }
 0x411   : > { %v1903_v33 = vmul.f32 %v3274_v1, %v3706_v8  ;;  %v3276_v39 = vpop.eup %3275 }
 0x412   : > { %v1905_v45 = vmul.f32 %v3276_v39, %v3700_v62  ;;  %v1219_v62 = vcombine.low %v1130_v26, %v1138_v17 }
 0x413   : > { %v1911_v37 = vpack.c.bf16 %v1903_v33, %v1903_v33 }
 0x414   : > { %v1913_v53 = vpack.c.bf16 %v1905_v45, %v1905_v45  ;;  %v1227_v57 = vrot.slane %v1219_v62, %v3484_v29 }
 0x415   : > { %3140 = vmatmul.mubr.msk.bf16.vlgmr.msra.gmra.mrb[12].mxu0 %vm1433_vm3, %v1911_v37 }
 0x416   : > { %3150 = vmatpush3.bf16.msra.mxu0 %v2061_v44  ;;  %3151 = vmatprep.mubr.msk.bf16.mxu0 %vm3318_vm1, %v3317_v3 }
 0x417   : > { %3161 = vmatprep.subr.bf16.mxu0 %v3317_v3 }
 0x418   : > { %v3278_v51 = vpop.eup %3277 }
 0x419   : > { %v1904_v8 = vmul.f32 %v3278_v51, %v3718_v50  ;;  %v3280_v26 = vpop.eup %3279 }
 0x41a   : > { %v1907_v32 = vmul.f32 %v3280_v26, %v3710_v21 }
 0x41b   : > { %v1912_v46 = vpack.c.bf16 %v1904_v8, %v1904_v8 }
 0x41c   : > { %v1915_v51 = vpack.c.bf16 %v1907_v32, %v1907_v32 }
 0x41d   : > { %3146 = vmatmul.mubr.msk.bf16.vlgmr.msra.gmra.mrb[28].mxu1 %vm1433_vm3, %v1912_v46  ;;  %3152 = vmatmul.mubr.msk.bf16.vlgmr.msra.gmra.mrb[16].mxu0 %vm1433_vm3, %v1913_v53 }
 0x41e   : > { %3157 = vmatprep.mubr.msk.bf16.mxu1 %vm3318_vm1, %v3317_v3  ;;  %3163 = vmatprep.mubr.msk.bf16.mxu0 %vm3318_vm1, %v3317_v3 }
 0x43a   : > { %v1893_v20 = vpop.xlane.xlu1 %1892 }
 0x43e   : > { %v1884_v16 = vpop.xlane.xlu0 %1883 }
 0x43f   : > { %3281 = vrcp.f32 %v1884_v16 }
 0x440   : > { %3283 = vrcp.f32 %v1893_v20 }
 0x442   : > { %v1134_v56 = vpop.permute.xlu0 %1133 }
 0x443   : > { %v1235_v15 = vcombine.low %v1134_v56, %v1142_v54  ;;  %v1236_v50 = vcombine.high %v1134_v56, %v1142_v54 }
 0x445   : > { %v1243_v59 = vrot.slane %v1235_v15, %v3484_v29  ;;  %v1250_v52 = vrot.slane %v1236_v50, %v3484_v29 }
 0x447   : > { %v1251_v60 = vcombine.low %v1227_v57, %v1243_v59  ;;  %v1252_v61 = vcombine.high %v1227_v57, %v1243_v59  ;;  %v1267_v63 = vcombine.low %v1234_v42, %v1250_v52  ;;  %v1268_v0 = vcombine.high %v1234_v42, %v1250_v52 }
 0x449   : > { %v1259_v14 = vrot.slane %v1251_v60, %v3496_v38  ;;  %v1266_v58 = vrot.slane %v1252_v61, %v3496_v38  ;;  %v1275_v2 = vrot.slane %v1267_v63, %v3496_v38  ;;  %v1282_v19 = vrot.slane %v1268_v0, %v3496_v38  ;;  %v3282_v31 = vpop.eup %3281 }
 0x44a   : > { %v1906_v55 = vmul.f32 %v3282_v31, %v3751_v13  ;;  %v3284_v8 = vpop.eup %3283 }
 0x44b   : > { %v1355_v4 = vcombine.low %v1259_v14, %v1266_v58  ;;  %v2984_v5 = vcombine.high %v1259_v14, %v1266_v58  ;;  %v1371_v7 = vcombine.low %v1275_v2, %v1282_v19  ;;  %v2985_v9 = vcombine.high %v1275_v2, %v1282_v19 }
 0x44c   : > { %v1914_v45 = vpack.c.bf16 %v1906_v55, %v1906_v55  ;;  %v1909_v46 = vmul.f32 %v3284_v8, %v3747_v11 }
 0x44d   : > { %v1362_v10 = vrot.slane %v1355_v4, %v3484_v29  ;;  %v1370_v12 = vrot.slane %v2984_v5, %v3484_v29  ;;  %v1378_v22 = vrot.slane %v1371_v7, %v3484_v29  ;;  %v1386_v34 = vrot.slane %v2985_v9, %v3484_v29 }
 0x44e   : > { %v1917_v53 = vpack.c.bf16 %v1909_v46, %v1909_v46 }
 0x44f   : > { %v1387_v47 = vcombine.low %v1362_v10, %v1370_v12  ;;  %v1403_v6 = vcombine.low %v1378_v22, %v1386_v34  ;;  %v1388_v27 = vcombine.high %v1362_v10, %v1370_v12  ;;  %v1404_v24 = vcombine.high %v1378_v22, %v1386_v34 }
 0x451   : > { %v1395_v28 = vrot.slane %v1387_v47, %v3496_v38  ;;  %v1411_v18 = vrot.slane %v1403_v6, %v3496_v38  ;;  %v1402_v30 = vrot.slane %v1388_v27, %v3496_v38  ;;  %v1418_v49 = vrot.slane %v1404_v24, %v3496_v38 }
 0x453   : > { %v1419_v35 = vcombine.low %v1395_v28, %v1411_v18  ;;  %v1420_v36 = vcombine.high %v1395_v28, %v1411_v18  ;;  %v1421_v43 = vcombine.low %v1402_v30, %v1418_v49  ;;  %v1422_v48 = vcombine.high %v1402_v30, %v1418_v49 }
 0x455   : > { %v1427_v1 = vpack.c.bf16 %v1419_v35, %v1419_v35  ;;  %v1428_v33 = vpack.c.bf16 %v1420_v36, %v1420_v36  ;;  %v1429_v39 = vpack.c.bf16 %v1421_v43, %v1421_v43  ;;  %v1430_v44 = vpack.c.bf16 %v1422_v48, %v1422_v48 }
 0x457   : > { %v2107_v25 = vsel %vm1921_vm4, %v1427_v1, 0  ;;  %v2153_v37 = vsel %vm1921_vm4, %v1428_v33, 0  ;;  %v2199_v21 = vsel %vm1921_vm4, %v1429_v39, 0  ;;  %v2245_v13 = vsel %vm1921_vm4, %v1430_v44, 0 }
 0x458   : > { %3156 = vmatpush3.bf16.msra.mxu1 %v2107_v25  ;;  %3162 = vmatpush3.bf16.msra.mxu0 %v2153_v37 }
 0x459   : > { %3167 = vmatprep.subr.bf16.mxu1 %v3317_v3  ;;  %3173 = vmatprep.subr.bf16.mxu0 %v3317_v3 }
 0x45b   : > { %3158 = vmatmul.mubr.msk.bf16.vlgmr.msra.gmra.mrb[32].mxu1 %vm1433_vm3, %v1914_v45  ;;  %3164 = vmatmul.mubr.msk.bf16.vlgmr.msra.gmra.mrb[20].mxu0 %vm1433_vm3, %v1915_v51 }
 0x45c   : > { %3168 = vmatpush3.bf16.msra.mxu1 %v2199_v21  ;;  %3174 = vmatpush3.bf16.msra.mxu0 %v2245_v13 }
 0x45d   : > { %3175 = vmatprep.mubr.msk.bf16.mxu0 %vm3318_vm1, %v3317_v3  ;;  %3169 = vmatprep.mubr.msk.bf16.mxu1 %vm3318_vm1, %v3317_v3 }
 0x45e   : > { %3179 = vmatprep.subr.bf16.mxu1 %v3317_v3  ;;  %3187 = vmatprep.subr.bf16.mxu0 %v3317_v3 }
 0x463   : > { %3176 = vmatmul.mubr.msk.bf16.vlgmr.msra.gmra.mrb[24].mxu0 %vm1433_vm3, %v1917_v53 }
 0x464   : > { %3203 = vmatprep.mubr.msk.bf16.mxu0 %vm3318_vm1, %v3317_v3 }
 0x473   : > { %v1890_v17 = vpop.xlane.xlu0 %1889 }
 0x474   : > { %3285 = vrcp.f32 %v1890_v17 }
 0x477   : > { %v2290_v50 = vpop.xlane.xlu0 %2289 }
 0x478   : > { %vm2294_vm6 = vcmp.gt.f32.partialorder %v2290_v50, -0.5 }
 0x479   : > { %v3002_v59 = vsel %vm2294_vm6, 1.0, %v3317_v3 }
 0x47e   : > { %v3286_v16 = vpop.eup %3285 }
 0x47f   : > { %v1908_v11 = vmul.f32 %v3286_v16, %v3758_v23  ;;  %v2303_v23 = vrot.slane %v3002_v59, %v3655_v41 }
 0x481   : > { %v1916_v62 = vpack.c.bf16 %v1908_v11, %v1908_v11 }
 0x483   : > { %3170 = vmatmul.mubr.msk.bf16.vlgmr.msra.gmra.mrb[36].mxu1 %vm1433_vm3, %v1916_v62  ;;  %v2293_v62 = vpop.xlane.xlu0 %2292 }
 0x484   : > { %3183 = vmatprep.mubr.msk.bf16.mxu1 %vm3318_vm1, %v3317_v3  ;;  %vm2295_vm7 = vcmp.gt.f32.partialorder %v2293_v62, -0.5 }
 0x485   : > { %v3003_v50 = vsel %vm2295_vm7, 1.0, %v3317_v3 }
 0x4e0   : > { %v1959_v40 = vpop.f32.mrb[24].mxu1 }
 0x4e1   : > { %v3135_v54 = vpop.f32.mrb[25].mxu1  ;;  %v2308_v0 = vmul.f32 %v2303_v23, %v1959_v40 }
 0x4e2   : > { %v1962_v56 = vpop.f32.mrb[26].mxu1 }
 0x4e3   : > { %v3136_v15 = vpop.f32.mrb[27].mxu1 }
 0x4e8   : > { %v2005_v57 = vpop.f32.mrb[12].mxu0 }
 0x4e9   : > { %v3141_v42 = vpop.f32.mrb[13].mxu0  ;;  %v2309_v14 = vmul.f32 %v2303_v23, %v2005_v57 }
 0x4ea   : > { %v2008_v52 = vpop.f32.mrb[14].mxu0 }
 0x4eb   : > { %v3142_v60 = vpop.f32.mrb[15].mxu0 }
 0x4ec   : > { %v2307_v60 = vrot.slane %v3003_v50, %v3655_v41 }
 0x4f0   : > { %v2051_v61 = vpop.f32.mrb[28].mxu1  ;;  %v2097_v63 = vpop.f32.mrb[16].mxu0 }
 0x4f1   : > { %v2310_v58 = vmul.f32 %v2303_v23, %v2051_v61  ;;  %v2311_v2 = vmul.f32 %v2303_v23, %v2097_v63  ;;  %v3147_v19 = vpop.f32.mrb[29].mxu1  ;;  %v3153_v4 = vpop.f32.mrb[17].mxu0 }
 0x4f2   : > { %v2054_v5 = vpop.f32.mrb[30].mxu1  ;;  %v2100_v7 = vpop.f32.mrb[18].mxu0 }
 0x4f3   : > { %v2316_v9 = vcombine.low %v2308_v0, %v2310_v58  ;;  %v2317_v20 = vcombine.high %v2308_v0, %v2310_v58  ;;  %v2332_v10 = vcombine.low %v2309_v14, %v2311_v2  ;;  %v2333_v12 = vcombine.high %v2309_v14, %v2311_v2  ;;  %v3148_v22 = vpop.f32.mrb[31].mxu1  ;;  %v3154_v34 = vpop.f32.mrb[19].mxu0 }
 0x4f5   : > { %v2324_v47 = vrot.slane %v2316_v9, %v3484_v29  ;;  %v2331_v6 = vrot.slane %v2317_v20, %v3484_v29  ;;  %v2340_v27 = vrot.slane %v2332_v10, %v3484_v29  ;;  %v2347_v24 = vrot.slane %v2333_v12, %v3484_v29 }
 0x4f7   : > { %v2348_v26 = vcombine.low %v2324_v47, %v2340_v27  ;;  %v2349_v28 = vcombine.high %v2324_v47, %v2340_v27  ;;  %v2364_v18 = vcombine.low %v2331_v6, %v2347_v24  ;;  %v2365_v30 = vcombine.high %v2331_v6, %v2347_v24 }
 0x4f9   : > { %v2356_v49 = vrot.slane %v2348_v26, %v3496_v38  ;;  %v2363_v31 = vrot.slane %v2349_v28, %v3496_v38  ;;  %v2372_v35 = vrot.slane %v2364_v18, %v3496_v38  ;;  %v2379_v36 = vrot.slane %v2365_v30, %v3496_v38  ;;  %v3245_v18 = vld [vmem:[%s3405_s19] sm:$0xff]  }
 0x4fa   : > { %3180 = vmatpush3.bf16.msra.mxu1 %v3245_v18 }
 0x4fb   : > { %v2452_v43 = vcombine.low %v2356_v49, %v2363_v31  ;;  %v3004_v48 = vcombine.high %v2356_v49, %v2363_v31  ;;  %v2468_v32 = vcombine.low %v2372_v35, %v2379_v36  ;;  %v3005_v55 = vcombine.high %v2372_v35, %v2379_v36  ;;  %3181 = vmatprep.subr.bf16.mxu1 %v3317_v3 }
 0x4fd   : > { %v2459_v1 = vrot.slane %v2452_v43, %v3484_v29  ;;  %v2467_v33 = vrot.slane %v3004_v48, %v3484_v29  ;;  %v2475_v25 = vrot.slane %v2468_v32, %v3484_v29  ;;  %v2483_v37 = vrot.slane %v3005_v55, %v3484_v29  ;;  %v3246_v55 = vld [vmem:[%s3405_s19 + $0x8] sm:$0xff]   ;;  %s3328_s19 = smov 24  }
 0x4fe   : > { %3182 = vmatpush3.bf16.msra.mxu1 %v3246_v55 }
 0x4ff   : > { %v2484_v39 = vcombine.low %v2459_v1, %v2467_v33  ;;  %v2500_v44 = vcombine.low %v2475_v25, %v2483_v37  ;;  %v2485_v45 = vcombine.high %v2459_v1, %v2467_v33  ;;  %v2501_v51 = vcombine.high %v2475_v25, %v2483_v37 }
 0x501   : > { %v3841_v8 = vrot.slane %v2484_v39, %v3496_v38  ;;  %v3844_v21 = vrot.slane %v2500_v44, %v3496_v38  ;;  %v3847_v13 = vrot.slane %v2485_v45, %v3496_v38  ;;  %v3850_v46 = vrot.slane %v2501_v51, %v3496_v38 }
 0x503   : > { %v2517_v53 = vcombine.high %v3841_v8, %v3844_v21  ;;  %v2518_v17 = vcombine.low %v3847_v13, %v3850_v46  ;;  %v2519_v16 = vcombine.high %v3847_v13, %v3850_v46  ;;  %v2516_v11 = vcombine.low %v3841_v8, %v3844_v21  ;;  %v3250_v8 = vld [vmem:[%s3415_s26 + $0x18] sm:$0xff]   ;;  %v3251_v21 = vld [vmem:[%s3415_s26 + $0x20] sm:$0xff]  }
 0x505   : > { %2590 = vrot.lane.b32.xlu1 %v2517_v53, %s3326_s25  ;;  %v3247_v53 = vld [vmem:[%s3415_s26] sm:$0xff]  }
 0x506   : > { %3188 = vmatpush3.bf16.msra.mxu0 %v3247_v53 }
 0x507   : > { %3189 = vmatprep.subr.bf16.mxu0 %v3317_v3 }
 0x509   : > { %2598 = vrot.lane.b32.xlu1 %v2518_v17, %s3327_s11 }
 0x52e   : > { %v2143_v40 = vpop.f32.mrb[32].mxu1  ;;  %v2189_v54 = vpop.f32.mrb[20].mxu0 }
 0x52f   : > { %v3159_v56 = vpop.f32.mrb[33].mxu1  ;;  %v3165_v15 = vpop.f32.mrb[21].mxu0  ;;  %v2313_v61 = vmul.f32 %v2307_v60, %v2189_v54  ;;  %v2312_v5 = vmul.f32 %v2307_v60, %v2143_v40 }
 0x530   : > { %v2146_v57 = vpop.f32.mrb[34].mxu1  ;;  %v2192_v42 = vpop.f32.mrb[22].mxu0  ;;  %v3248_v56 = vld [vmem:[%s3415_s26 + $0x8] sm:$0xff]  }
 0x531   : > { %v3160_v59 = vpop.f32.mrb[35].mxu1  ;;  %v3166_v52 = vpop.f32.mrb[23].mxu0  ;;  %3190 = vmatpush3.bf16.msra.mxu0 %v3248_v56 }
 0x532   : > { %3191 = vmatprep.subr.bf16.mxu0 %v3317_v3 }
 0x536   : > { %v2281_v23 = vpop.f32.mrb[24].mxu0 }
 0x537   : > { %v2315_v63 = vmul.f32 %v2307_v60, %v2281_v23  ;;  %v3177_v0 = vpop.f32.mrb[25].mxu0 }
 0x538   : > { %v2284_v14 = vpop.f32.mrb[26].mxu0 }
 0x539   : > { %v2400_v58 = vcombine.low %v2313_v61, %v2315_v63  ;;  %v2401_v2 = vcombine.high %v2313_v61, %v2315_v63  ;;  %v3178_v19 = vpop.f32.mrb[27].mxu0 }
 0x53a   : > { %v3254_v19 = vld [vmem:[%s3415_s26 + $0x38] sm:$0xff]  }
 0x53b   : > { %v2408_v34 = vrot.slane %v2400_v58, %v3484_v29  ;;  %v2415_v41 = vrot.slane %v2401_v2, %v3484_v29  ;;  %v3249_v58 = vld [vmem:[%s3415_s26 + $0x10] sm:$0xff]  }
 0x53c   : > { %3192 = vmatpush3.bf16.msra.mxu0 %v3249_v58  ;;  %v3253_v2 = vld [vmem:[%s3415_s26 + $0x30] sm:$0xff]  }
 0x53d   : > { %3193 = vmatprep.subr.bf16.mxu0 %v3317_v3 }
 0x540   : > { %3194 = vmatpush3.bf16.msra.mxu0 %v3250_v8 }
 0x541   : > { %3195 = vmatprep.subr.bf16.mxu0 %v3317_v3 }
 0x544   : > { %3196 = vmatpush3.bf16.msra.mxu0 %v3251_v21 }
 0x545   : > { %3197 = vmatprep.subr.bf16.mxu0 %v3317_v3 }
 0x556   : > { %v2235_v4 = vpop.f32.mrb[36].mxu1 }
 0x557   : > { %v2314_v7 = vmul.f32 %v2307_v60, %v2235_v4  ;;  %v3171_v9 = vpop.f32.mrb[37].mxu1  ;;  %v3008_v4 = vld [vmem:[%s427_s22] ss:$0 sm:$0xff] }
 0x558   : > { %v2238_v20 = vpop.f32.mrb[38].mxu1 }
 0x559   : > { %v2384_v10 = vcombine.low %v2312_v5, %v2314_v7  ;;  %v2385_v12 = vcombine.high %v2312_v5, %v2314_v7  ;;  %v3172_v22 = vpop.f32.mrb[39].mxu1 }
 0x55b   : > { %v2392_v47 = vrot.slane %v2384_v10, %v3484_v29  ;;  %v2399_v6 = vrot.slane %v2385_v12, %v3484_v29 }
 0x55d   : > { %v2416_v27 = vcombine.low %v2392_v47, %v2408_v34  ;;  %v2417_v24 = vcombine.high %v2392_v47, %v2408_v34  ;;  %v2432_v26 = vcombine.low %v2399_v6, %v2415_v41  ;;  %v2433_v28 = vcombine.high %v2399_v6, %v2415_v41 }
 0x55f   : > { %v2424_v30 = vrot.slane %v2416_v27, %v3496_v38  ;;  %v2431_v49 = vrot.slane %v2417_v24, %v3496_v38  ;;  %v2440_v31 = vrot.slane %v2432_v26, %v3496_v38  ;;  %v2447_v35 = vrot.slane %v2433_v28, %v3496_v38 }
 0x561   : > { %v2520_v36 = vcombine.low %v2424_v30, %v2431_v49  ;;  %v3006_v43 = vcombine.high %v2424_v30, %v2431_v49  ;;  %v2536_v48 = vcombine.low %v2440_v31, %v2447_v35  ;;  %v3007_v32 = vcombine.high %v2440_v31, %v2447_v35  ;;  %v3012_v30 = vld [vmem:[%s435_s14] ss:$0 sm:$0xff] }
 0x562   : > { %v3291_v31 = vld [vmem:[%s3950_s8] sm:$0xff] }
 0x563   : > { %v2527_v1 = vrot.slane %v2520_v36, %v3484_v29  ;;  %v2535_v33 = vrot.slane %v3006_v43, %v3484_v29  ;;  %v2543_v25 = vrot.slane %v2536_v48, %v3484_v29  ;;  %v2551_v37 = vrot.slane %v3007_v32, %v3484_v29  ;;  %v3292_v32 = vld [vmem:[%s3950_s8 + $0x8] sm:$0xff] }
 0x565   : > { %v2553_v39 = vcombine.high %v2527_v1, %v2535_v33  ;;  %v2569_v44 = vcombine.high %v2543_v25, %v2551_v37  ;;  %v2552_v45 = vcombine.low %v2527_v1, %v2535_v33  ;;  %v2568_v51 = vcombine.low %v2543_v25, %v2551_v37 }
 0x567   : > { %v2567_v17 = vrot.slane %v2553_v39, %v3496_v38  ;;  %v2583_v62 = vrot.slane %v2569_v44, %v3496_v38  ;;  %v2560_v40 = vrot.slane %v2552_v45, %v3496_v38  ;;  %v2576_v54 = vrot.slane %v2568_v51, %v3496_v38 }
 0x569   : > { %v2586_v15 = vcombine.low %v2567_v17, %v2583_v62  ;;  %v2585_v29 = vcombine.high %v2560_v40, %v2576_v54  ;;  %v2587_v50 = vcombine.high %v2567_v17, %v2583_v62  ;;  %v2584_v57 = vcombine.low %v2560_v40, %v2576_v54 }
 0x56b   : > { %2600 = vrot.lane.b32.xlu1 %v2586_v15, %s3327_s11  ;;  %2592 = vrot.lane.b32.xlu0 %v2585_v29, %s3326_s25 }
 0x56f   : > { %2608 = vrot.lane.b32.xlu1 %v2587_v50, %s3328_s19  ;;  %2606 = vrot.lane.b32.xlu0 %v2519_v16, %s3328_s19 }
 0x577   : > { %v2591_v38 = vpop.permute.xlu1 %2590 }
 0x578   : > { %v2612_v23 = vsel %vm1433_vm3, %v2516_v11, %v2591_v38  ;;  %v3252_v11 = vld [vmem:[%s3415_s26 + $0x28] sm:$0xff]  }
 0x579   : > { %3198 = vmatpush3.bf16.msra.mxu0 %v3252_v11 }
 0x57a   : > { %3199 = vmatprep.subr.bf16.mxu0 %v3317_v3 }
 0x57b   : > { %v2599_v42 = vpop.permute.xlu1 %2598 }
 0x57c   : > { %v2615_v61 = vsel %vm2614_vm8, %v2612_v23, %v2599_v42 }
 0x57d   : > { %3200 = vmatpush3.bf16.msra.mxu0 %v3253_v2 }
 0x57e   : > { %3201 = vmatprep.subr.bf16.mxu0 %v3317_v3 }
 0x581   : > { %3202 = vmatpush3.bf16.msra.mxu0 %v3254_v19 }
 0x5dd   : > { %v2601_v59 = vpop.permute.xlu1 %2600  ;;  %v2593_v52 = vpop.permute.xlu0 %2592 }
 0x5de   : > { %v2613_v60 = vsel %vm1433_vm3, %v2584_v57, %v2593_v52 }
 0x5df   : > { %v2616_v13 = vsel %vm2614_vm8, %v2613_v60, %v2601_v59 }
 0x5e1   : > { %v2609_v63 = vpop.permute.xlu1 %2608  ;;  %v2607_v46 = vpop.permute.xlu0 %2606 }
 0x5e2   : > { %v2619_v16 = vsel %vm2617_vm9, %v2616_v13, %v2609_v63  ;;  %v2618_v0 = vsel %vm2617_vm9, %v2615_v61, %v2607_v46 }
 0x5e3   : > { %v2620_v14 = vpack.c.bf16 %v2619_v16, %v2618_v0  ;;  %v2811_v35 = vadd.f32 %v3291_v31, %v2618_v0  ;;  %v2812_v55 = vadd.f32 %v3292_v32, %v2619_v16 }
 0x5e5   : > { %3184 = vmatmul.mubr.msk.bf16.vlgmr.msra.gmra.mrb[40].mxu1 %vm478_vm2, %v2620_v14 }
 0x6b8   : > { %v2681_v5 = vpop.f32.mrb[40].mxu1 }
 0x6b9   : > { %v2682_v7 = vadd.f32 %v3008_v4, %v2681_v5  ;;  %v3185_v9 = vpop.f32.mrb[41].mxu1 }
 0x6ba   : > { %v2684_v20 = vpop.f32.mrb[42].mxu1 }
 0x6bb   : > { %v2690_v10 = vmul.f32 0.70710677, %v2682_v7  ;;  %v2685_v12 = vadd.f32 %v3008_v4, %v2684_v20  ;;  %v3186_v22 = vpop.f32.mrb[43].mxu1  ;;  %v2688_v6 = vmul.f32 0.5, %v2682_v7 }
 0x6bd   : > { %3287 = verf.f32 %v2690_v10  ;;  %v2691_v34 = vmul.f32 0.70710677, %v2685_v12  ;;  %v2689_v27 = vmul.f32 0.5, %v2685_v12 }
 0x6bf   : > { %3289 = verf.f32 %v2691_v34 }
 0x6c7   : > { %v3288_v41 = vpop.eup %3287 }
 0x6c8   : > { %v2694_v3 = vadd.f32 1.0, %v3288_v41 }
 0x6c9   : > { %v3290_v47 = vpop.eup %3289 }
 0x6ca   : > { %v2695_v24 = vadd.f32 1.0, %v3290_v47  ;;  %v2696_v26 = vmul.f32 %v2694_v3, %v2688_v6 }
 0x6cc   : > { %v2697_v28 = vmul.f32 %v2695_v24, %v2689_v27 }
 0x6ce   : > { %v2698_v18 = vpack.c.bf16 %v2697_v28, %v2696_v26 }
 0x6d0   : > { %3204 = vmatmul.mubr.bf16.vlgmr.msra.gmra.mrb[28].mxu0 %v2698_v18 }
 0x7a3   : > { %v2804_v49 = vpop.f32.mrb[28].mxu0 }
 0x7a4   : > { %v2805_v36 = vadd.f32 %v3012_v30, %v2804_v49  ;;  %v3205_v43 = vpop.f32.mrb[29].mxu0 }
 0x7a5   : > { %v2807_v48 = vpop.f32.mrb[30].mxu0 }
 0x7a6   : > { %v2813_v1 = vadd.f32 %v2811_v35, %v2805_v36  ;;  %v2808_v33 = vadd.f32 %v3012_v30, %v2807_v48  ;;  %v3206_v25 = vpop.f32.mrb[31].mxu0 }
 0x7a8   : > { %2815 = vst.msk [vmem:[%s3950_s8] sm:$0xff] %vm478_vm2, %v2813_v1  ;;  %v2814_v37 = vadd.f32 %v2812_v55, %v2808_v33 }
 0x7aa   : > { %2816 = vst.msk [vmem:[%s3950_s8 + $0x8] sm:$0xff] %vm478_vm2, %v2814_v37 }
 0x7ab PF: > { %s18_s29 = sadd.s32 1, %s3315_s29   ;;  %s3951_s27 = smov %s3311_s28 }
 0x7ac   : > { %p15_p6 = scmp.ge.s32.totalorder %s18_s29, 6   ;;  %s3952_s28 = smov %s3954_s30 }
 0x7ae   :  { %17 = sbr.rel (!%p15_p6) target bundleno = 2 (0x2), region = 107 }

</bundles_post_ra>
